<compile_context>
chip_gen: v6e
topology: v6e:2x2x1
jax: 0.10.0
libtpu: 0.0.40
codegen_flags: <defaults>
</compile_context>

<pallas_src>
import jax
import jax.numpy as jnp
from jax.experimental import pallas as pl
from jax.experimental.pallas import tpu as pltpu

DIM_EMB = 96
N_HEAD = 6
HEAD_SIZE = DIM_EMB // N_HEAD      # 16
HIDDEN = 4 * DIM_EMB               # 384
SEQ = 8                            # input_seq_size
BATCH = 2
LN_EPS = 1e-5
DROPOUT_P = 0.2                    # identity in eval mode
NEG_INF = -1e30


def _layer_norm(x, gamma, beta):
    mu = jnp.mean(x, axis=-1, keepdims=True)
    xc = x - mu
    var = jnp.mean(xc * xc, axis=-1, keepdims=True)
    inv = jax.lax.rsqrt(var + LN_EPS)
    return xc * inv * gamma + beta


def _softmax_rows(s):
    m = jnp.max(s, axis=-1, keepdims=True)
    e = jnp.exp(s - m)
    den = jnp.sum(e, axis=-1, keepdims=True)
    # EUP reciprocal (otherwise-idle slot) + one Newton step for f32 accuracy.
    r = pl.reciprocal(den, approx=True)
    r = r * (2.0 - den * r)
    return e * r


def _block_kernel(x_ref, mask_ref, g1_ref, b1_ref, wqkv_ref, wp_ref, bp_ref,
                  g2_ref, b2_ref, w1_ref, fb1_ref, w2_ref, fb2_ref, o_ref):
    T = x_ref.shape[0]
    x = x_ref[...]                                  # (T, D) f32, one batch row

    # ---------- sub-layer 1: pre-LN multi-head self-attention + residual ----
    xn = _layer_norm(x, g1_ref[...], b1_ref[...])

    # Three good-sized projections (scale already folded into the Q weights).
    q = jnp.dot(xn, wqkv_ref[0], preferred_element_type=jnp.float32)   # (T, D)
    k = jnp.dot(xn, wqkv_ref[1], preferred_element_type=jnp.float32)
    v = jnp.dot(xn, wqkv_ref[2], preferred_element_type=jnp.float32)

    # Head-stack along SUBLANES: (N_HEAD*T, HEAD_SIZE); row h*T + t = head h, pos t.
    def head_stack(a):
        return jnp.concatenate(
            [a[:, h * HEAD_SIZE:(h + 1) * HEAD_SIZE] for h in range(N_HEAD)],
            axis=0)

    qh = head_stack(q)                              # (H*T, HEAD_SIZE)
    kh = head_stack(k)
    vh = head_stack(v)

    # All head scores in ONE MXU push: (H*T, H*T).  Cross-head blocks are
    # removed by the precomputed block-diagonal additive causal mask.
    s = jax.lax.dot_general(qh, kh, (((1,), (1,)), ((), ())),
                            preferred_element_type=jnp.float32)
    p = _softmax_rows(s + mask_ref[...])            # one batched softmax
    # TODO(synk): attention dropout (p=0.2) is identity in eval mode.

    # All heads' attention outputs in ONE push: (H*T, HEAD_SIZE).
    o = jnp.dot(p, vh, preferred_element_type=jnp.float32)

    # Fused output projection: accumulate head_h @ Wp[h*16:(h+1)*16, :]
    # (sublane-only slices; no lane-dim concatenation of head outputs).
    sa = jnp.dot(o[0:T], wp_ref[0:HEAD_SIZE, :],
                 preferred_element_type=jnp.float32)
    for h in range(1, N_HEAD):
        sa = sa + jnp.dot(o[h * T:(h + 1) * T],
                          wp_ref[h * HEAD_SIZE:(h + 1) * HEAD_SIZE, :],
                          preferred_element_type=jnp.float32)
    sa = sa + bp_ref[...]
    # TODO(synk): output-projection dropout (p=0.2) is identity in eval mode.
    x1 = x + sa

    # ---------- sub-layer 2: pre-LN feed-forward + residual -----------------
    xn2 = _layer_norm(x1, g2_ref[...], b2_ref[...])
    hdn = jnp.dot(xn2, w1_ref[...], preferred_element_type=jnp.float32) + fb1_ref[...]
    hdn = jnp.maximum(hdn, 0.0)
    ff = jnp.dot(hdn, w2_ref[...], preferred_element_type=jnp.float32) + fb2_ref[...]
    # TODO(synk): feed-forward dropout (p=0.2) is identity in eval mode.
    o_ref[...] = (x1 + ff).astype(o_ref.dtype)


def prepare_block_params(params, seq_len=SEQ):
    """ONE-TIME parameter prep (hoisted out of the per-call path)."""
    (g1, b1, wq, wk, wv, wp, bp, g2, b2, w1, fb1, w2, fb2) = params
    D = DIM_EMB
    # Stack Q/K/V weights; fold the exact 1/sqrt(HEAD_SIZE)=0.25 scale into Q.
    wqkv = jnp.stack([wq * (HEAD_SIZE ** -0.5), wk, wv], axis=0)        # (3, D, D)
    # Additive mask on the (H*T, H*T) score slab: causal inside each head's
    # diagonal block, -1e30 on all cross-head blocks and above the diagonal.
    blk = jnp.kron(jnp.eye(N_HEAD, dtype=jnp.float32),
                   jnp.tril(jnp.ones((seq_len, seq_len), jnp.float32)))
    mask = jnp.where(blk > 0, 0.0, NEG_INF).astype(jnp.float32)
    return (mask, g1.reshape(1, D), b1.reshape(1, D), wqkv, wp,
            bp.reshape(1, D), g2.reshape(1, D), b2.reshape(1, D),
            w1, fb1.reshape(1, HIDDEN), w2, fb2.reshape(1, D))


@jax.jit
def transformer_block(x, prepped):
    """x: (B, T, DIM_EMB) f32; `prepped` from prepare_block_params (cached)."""
    B, T, D = x.shape
    (mask, g1, b1, wqkv, wp, bp, g2, b2, w1, fb1, w2, fb2) = prepped
    x2d = x.reshape(B * T, D)
    args = (x2d, mask, g1, b1, wqkv, wp, bp, g2, b2, w1, fb1, w2, fb2)

    # x: one batch element (T rows) per grid step; all params: constant block
    # index across the grid (fetched once, no re-DMA between steps).
    in_specs = [pl.BlockSpec((T, D), lambda i: (i, 0))]
    for a in args[1:]:
        in_specs.append(pl.BlockSpec(a.shape, lambda i, n=a.ndim: (0,) * n))

    out2d = pl.pallas_call(
        _block_kernel,
        out_shape=jax.ShapeDtypeStruct((B * T, D), jnp.float32),
        grid_spec=pltpu.PrefetchScalarGridSpec(
            num_scalar_prefetch=0,
            grid=(B,),                       # sharded across TensorCores on v7x
            in_specs=in_specs,
            out_specs=pl.BlockSpec((T, D), lambda i: (i, 0)),
        ),
        compiler_params=pltpu.CompilerParams(
            dimension_semantics=("parallel",),
        ),
    )(*args)
    return out2d.reshape(B, T, D)


def reference_block(x, params):
    """Pure-JAX reference matching the PyTorch Block (eval mode)."""
    (g1, b1, wq, wk, wv, wp, bp, g2, b2, w1, fb1, w2, fb2) = params
    B, T, D = x.shape

    def layer_norm(z, g, b):
        mu = jnp.mean(z, axis=-1, keepdims=True)
        var = jnp.mean((z - mu) ** 2, axis=-1, keepdims=True)
        return (z - mu) / jnp.sqrt(var + LN_EPS) * g + b

    xn = layer_norm(x, g1, b1)
    q = xn @ wq
    k = xn @ wk
    v = xn @ wv
    qh = q.reshape(B, T, N_HEAD, HEAD_SIZE)
    kh = k.reshape(B, T, N_HEAD, HEAD_SIZE)
    vh = v.reshape(B, T, N_HEAD, HEAD_SIZE)
    wei = jnp.einsum('bqnh,bknh->bnqk', qh, kh) * (HEAD_SIZE ** -0.5)
    tri = jnp.tril(jnp.ones((T, T), dtype=bool))
    wei = jnp.where(tri, wei, -jnp.inf)
    wei = jax.nn.softmax(wei, axis=-1)
    sa = jnp.einsum('bnqk,bknh->bqnh', wei, vh).reshape(B, T, D)
    sa = sa @ wp + bp
    x1 = x + sa
    xn2 = layer_norm(x1, g2, b2)
    ff = jnp.maximum(xn2 @ w1 + fb1, 0.0) @ w2 + fb2
    return x1 + ff


if __name__ == "__main__":
    key = jax.random.PRNGKey(0)
    keys = jax.random.split(key, 14)

    x = jax.random.normal(keys[0], (BATCH, SEQ, DIM_EMB), dtype=jnp.float32)

    def lin_init(k, fan_in, shape):
        s = 1.0 / jnp.sqrt(jnp.float32(fan_in))
        return jax.random.uniform(k, shape, jnp.float32, -s, s)

    # per-head q/k/v weights stored fused over heads: head h -> cols [h*16, (h+1)*16)
    wq = lin_init(keys[1], DIM_EMB, (DIM_EMB, DIM_EMB))
    wk = lin_init(keys[2], DIM_EMB, (DIM_EMB, DIM_EMB))
    wv = lin_init(keys[3], DIM_EMB, (DIM_EMB, DIM_EMB))
    wp = lin_init(keys[4], DIM_EMB, (DIM_EMB, DIM_EMB))
    bp = lin_init(keys[5], DIM_EMB, (DIM_EMB,))
    w1 = lin_init(keys[6], DIM_EMB, (DIM_EMB, HIDDEN))
    fb1 = lin_init(keys[7], DIM_EMB, (HIDDEN,))
    w2 = lin_init(keys[8], HIDDEN, (HIDDEN, DIM_EMB))
    fb2 = lin_init(keys[9], HIDDEN, (DIM_EMB,))
    # LayerNorm affine params (randomized to exercise the affine path)
    g1 = 1.0 + 0.1 * jax.random.normal(keys[10], (DIM_EMB,), jnp.float32)
    b1 = 0.1 * jax.random.normal(keys[11], (DIM_EMB,), jnp.float32)
    g2 = 1.0 + 0.1 * jax.random.normal(keys[12], (DIM_EMB,), jnp.float32)
    b2 = 0.1 * jax.random.normal(keys[13], (DIM_EMB,), jnp.float32)

    params = (g1, b1, wq, wk, wv, wp, bp, g2, b2, w1, fb1, w2, fb2)

    # One-time prep (would be cached alongside the weights in real use).
    prepped = prepare_block_params(params)

    out = transformer_block(x, prepped)
    out = jax.block_until_ready(out)

    ref = reference_block(x, params)
    assert out.shape == (BATCH, SEQ, DIM_EMB)
    max_err = jnp.max(jnp.abs(out - ref))
    assert jnp.allclose(out, ref, atol=1e-4, rtol=1e-4), f"max abs err {max_err}"

    print("KERNEL_OK")
</pallas_src>

<mosaic_0001>
module attributes {stable_mosaic.version = 11 : i64} {
  func.func @_block_kernel(%arg0: i32, %arg1: memref<8x96xf32, #tpu.memory_space<vmem>>, %arg2: memref<48x48xf32, #tpu.memory_space<vmem>>, %arg3: memref<1x96xf32, #tpu.memory_space<vmem>>, %arg4: memref<1x96xf32, #tpu.memory_space<vmem>>, %arg5: memref<3x96x96xf32, #tpu.memory_space<vmem>>, %arg6: memref<96x96xf32, #tpu.memory_space<vmem>>, %arg7: memref<1x96xf32, #tpu.memory_space<vmem>>, %arg8: memref<1x96xf32, #tpu.memory_space<vmem>>, %arg9: memref<1x96xf32, #tpu.memory_space<vmem>>, %arg10: memref<96x384xf32, #tpu.memory_space<vmem>>, %arg11: memref<1x384xf32, #tpu.memory_space<vmem>>, %arg12: memref<384x96xf32, #tpu.memory_space<vmem>>, %arg13: memref<1x96xf32, #tpu.memory_space<vmem>>, %arg14: memref<8x96xf32, #tpu.memory_space<vmem>>) attributes {dimension_semantics = [#tpu.dimension_semantics<parallel>], iteration_bounds = array<i64: 2>, scalar_prefetch = 0 : i64, scratch_operands = 0 : i64, tpu.core_type = #tpu.core_type<tc>, window_params = [{transform_indices = @transform_0, window_bounds = array<i64: 8, 96>}, {pipeline_mode = #tpu.pipeline_mode<synchronous>, transform_indices = @transform_1, window_bounds = array<i64: 48, 48>}, {pipeline_mode = #tpu.pipeline_mode<synchronous>, transform_indices = @transform_2, window_bounds = array<i64: 1, 96>}, {pipeline_mode = #tpu.pipeline_mode<synchronous>, transform_indices = @transform_3, window_bounds = array<i64: 1, 96>}, {pipeline_mode = #tpu.pipeline_mode<synchronous>, transform_indices = @transform_4, window_bounds = array<i64: 3, 96, 96>}, {pipeline_mode = #tpu.pipeline_mode<synchronous>, transform_indices = @transform_5, window_bounds = array<i64: 96, 96>}, {pipeline_mode = #tpu.pipeline_mode<synchronous>, transform_indices = @transform_6, window_bounds = array<i64: 1, 96>}, {pipeline_mode = #tpu.pipeline_mode<synchronous>, transform_indices = @transform_7, window_bounds = array<i64: 1, 96>}, {pipeline_mode = #tpu.pipeline_mode<synchronous>, transform_indices = @transform_8, window_bounds = array<i64: 1, 96>}, {pipeline_mode = #tpu.pipeline_mode<synchronous>, transform_indices = @transform_9, window_bounds = array<i64: 96, 384>}, {pipeline_mode = #tpu.pipeline_mode<synchronous>, transform_indices = @transform_10, window_bounds = array<i64: 1, 384>}, {pipeline_mode = #tpu.pipeline_mode<synchronous>, transform_indices = @transform_11, window_bounds = array<i64: 384, 96>}, {pipeline_mode = #tpu.pipeline_mode<synchronous>, transform_indices = @transform_12, window_bounds = array<i64: 1, 96>}, {transform_indices = @transform_13, window_bounds = array<i64: 8, 96>}]} {
    %c0 = arith.constant 0 : index
    %c0_0 = arith.constant 0 : index
    %0 = vector.load %arg1[%c0, %c0_0] : memref<8x96xf32, #tpu.memory_space<vmem>>, vector<8x96xf32>
    %c0_1 = arith.constant 0 : index
    %c0_2 = arith.constant 0 : index
    %1 = vector.load %arg3[%c0_1, %c0_2] : memref<1x96xf32, #tpu.memory_space<vmem>>, vector<1x96xf32>
    %c0_3 = arith.constant 0 : index
    %c0_4 = arith.constant 0 : index
    %2 = vector.load %arg4[%c0_3, %c0_4] : memref<1x96xf32, #tpu.memory_space<vmem>>, vector<1x96xf32>
    %cst = arith.constant dense<0.000000e+00> : vector<8xf32>
    %3 = vector.multi_reduction <add>, %0, %cst [1] : vector<8x96xf32> to vector<8xf32>
    %4 = vector.shape_cast %3 : vector<8xf32> to vector<8x1xf32>
    %cst_5 = arith.constant 9.600000e+01 : f32
    %5 = vector.broadcast %cst_5 : f32 to vector<8x1xf32>
    %6 = arith.divf %4, %5 : vector<8x1xf32>
    %7 = vector.broadcast %6 : vector<8x1xf32> to vector<8x96xf32>
    %8 = arith.subf %0, %7 : vector<8x96xf32>
    %9 = arith.mulf %8, %8 : vector<8x96xf32>
    %cst_6 = arith.constant dense<0.000000e+00> : vector<8xf32>
    %10 = vector.multi_reduction <add>, %9, %cst_6 [1] : vector<8x96xf32> to vector<8xf32>
    %11 = vector.shape_cast %10 : vector<8xf32> to vector<8x1xf32>
    %cst_7 = arith.constant 9.600000e+01 : f32
    %12 = vector.broadcast %cst_7 : f32 to vector<8x1xf32>
    %13 = arith.divf %11, %12 : vector<8x1xf32>
    %cst_8 = arith.constant 9.99999974E-6 : f32
    %14 = vector.broadcast %cst_8 : f32 to vector<8x1xf32>
    %15 = arith.addf %13, %14 : vector<8x1xf32>
    %16 = math.rsqrt %15 : vector<8x1xf32>
    %17 = vector.broadcast %16 : vector<8x1xf32> to vector<8x96xf32>
    %18 = arith.mulf %8, %17 : vector<8x96xf32>
    %19 = vector.broadcast %1 : vector<1x96xf32> to vector<8x96xf32>
    %20 = arith.mulf %18, %19 : vector<8x96xf32>
    %21 = vector.broadcast %2 : vector<1x96xf32> to vector<8x96xf32>
    %22 = arith.addf %20, %21 : vector<8x96xf32>
    %c0_9 = arith.constant 0 : index
    %c0_10 = arith.constant 0 : index
    %c0_11 = arith.constant 0 : index
    %23 = vector.load %arg5[%c0_9, %c0_10, %c0_11] : memref<3x96x96xf32, #tpu.memory_space<vmem>>, vector<1x96x96xf32>
    %24 = vector.shape_cast %23 : vector<1x96x96xf32> to vector<96x96xf32>
    %cst_12 = arith.constant dense<0.000000e+00> : vector<8x96xf32>
    %25 = tpu.matmul %22, %24, %cst_12 {dimension_numbers = #tpu.dot_dimension_numbers<[1], [0], [0], [1], [0, 0, 1, 1], [], []>} : vector<8x96xf32>, vector<96x96xf32>, vector<8x96xf32> -> vector<8x96xf32>
    %c1 = arith.constant 1 : index
    %c0_13 = arith.constant 0 : index
    %c0_14 = arith.constant 0 : index
    %26 = vector.load %arg5[%c1, %c0_13, %c0_14] : memref<3x96x96xf32, #tpu.memory_space<vmem>>, vector<1x96x96xf32>
    %27 = vector.shape_cast %26 : vector<1x96x96xf32> to vector<96x96xf32>
    %cst_15 = arith.constant dense<0.000000e+00> : vector<8x96xf32>
    %28 = tpu.matmul %22, %27, %cst_15 {dimension_numbers = #tpu.dot_dimension_numbers<[1], [0], [0], [1], [0, 0, 1, 1], [], []>} : vector<8x96xf32>, vector<96x96xf32>, vector<8x96xf32> -> vector<8x96xf32>
    %c2 = arith.constant 2 : index
    %c0_16 = arith.constant 0 : index
    %c0_17 = arith.constant 0 : index
    %29 = vector.load %arg5[%c2, %c0_16, %c0_17] : memref<3x96x96xf32, #tpu.memory_space<vmem>>, vector<1x96x96xf32>
    %30 = vector.shape_cast %29 : vector<1x96x96xf32> to vector<96x96xf32>
    %cst_18 = arith.constant dense<0.000000e+00> : vector<8x96xf32>
    %31 = tpu.matmul %22, %30, %cst_18 {dimension_numbers = #tpu.dot_dimension_numbers<[1], [0], [0], [1], [0, 0, 1, 1], [], []>} : vector<8x96xf32>, vector<96x96xf32>, vector<8x96xf32> -> vector<8x96xf32>
    %32 = vector.extract_strided_slice %25 {offsets = [0, 0], sizes = [8, 16], strides = [1, 1]} : vector<8x96xf32> to vector<8x16xf32>
    %33 = vector.extract_strided_slice %25 {offsets = [0, 16], sizes = [8, 16], strides = [1, 1]} : vector<8x96xf32> to vector<8x16xf32>
    %34 = vector.extract_strided_slice %25 {offsets = [0, 32], sizes = [8, 16], strides = [1, 1]} : vector<8x96xf32> to vector<8x16xf32>
    %35 = vector.extract_strided_slice %25 {offsets = [0, 48], sizes = [8, 16], strides = [1, 1]} : vector<8x96xf32> to vector<8x16xf32>
    %36 = vector.extract_strided_slice %25 {offsets = [0, 64], sizes = [8, 16], strides = [1, 1]} : vector<8x96xf32> to vector<8x16xf32>
    %37 = vector.extract_strided_slice %25 {offsets = [0, 80], sizes = [8, 16], strides = [1, 1]} : vector<8x96xf32> to vector<8x16xf32>
    %38 = tpu.concatenate %32, %33, %34, %35, %36, %37 in 0 : vector<8x16xf32>, vector<8x16xf32>, vector<8x16xf32>, vector<8x16xf32>, vector<8x16xf32>, vector<8x16xf32> -> vector<48x16xf32>
    %39 = vector.extract_strided_slice %28 {offsets = [0, 0], sizes = [8, 16], strides = [1, 1]} : vector<8x96xf32> to vector<8x16xf32>
    %40 = vector.extract_strided_slice %28 {offsets = [0, 16], sizes = [8, 16], strides = [1, 1]} : vector<8x96xf32> to vector<8x16xf32>
    %41 = vector.extract_strided_slice %28 {offsets = [0, 32], sizes = [8, 16], strides = [1, 1]} : vector<8x96xf32> to vector<8x16xf32>
    %42 = vector.extract_strided_slice %28 {offsets = [0, 48], sizes = [8, 16], strides = [1, 1]} : vector<8x96xf32> to vector<8x16xf32>
    %43 = vector.extract_strided_slice %28 {offsets = [0, 64], sizes = [8, 16], strides = [1, 1]} : vector<8x96xf32> to vector<8x16xf32>
    %44 = vector.extract_strided_slice %28 {offsets = [0, 80], sizes = [8, 16], strides = [1, 1]} : vector<8x96xf32> to vector<8x16xf32>
    %45 = tpu.concatenate %39, %40, %41, %42, %43, %44 in 0 : vector<8x16xf32>, vector<8x16xf32>, vector<8x16xf32>, vector<8x16xf32>, vector<8x16xf32>, vector<8x16xf32> -> vector<48x16xf32>
    %46 = vector.extract_strided_slice %31 {offsets = [0, 0], sizes = [8, 16], strides = [1, 1]} : vector<8x96xf32> to vector<8x16xf32>
    %47 = vector.extract_strided_slice %31 {offsets = [0, 16], sizes = [8, 16], strides = [1, 1]} : vector<8x96xf32> to vector<8x16xf32>
    %48 = vector.extract_strided_slice %31 {offsets = [0, 32], sizes = [8, 16], strides = [1, 1]} : vector<8x96xf32> to vector<8x16xf32>
    %49 = vector.extract_strided_slice %31 {offsets = [0, 48], sizes = [8, 16], strides = [1, 1]} : vector<8x96xf32> to vector<8x16xf32>
    %50 = vector.extract_strided_slice %31 {offsets = [0, 64], sizes = [8, 16], strides = [1, 1]} : vector<8x96xf32> to vector<8x16xf32>
    %51 = vector.extract_strided_slice %31 {offsets = [0, 80], sizes = [8, 16], strides = [1, 1]} : vector<8x96xf32> to vector<8x16xf32>
    %52 = tpu.concatenate %46, %47, %48, %49, %50, %51 in 0 : vector<8x16xf32>, vector<8x16xf32>, vector<8x16xf32>, vector<8x16xf32>, vector<8x16xf32>, vector<8x16xf32> -> vector<48x16xf32>
    %cst_19 = arith.constant dense<0.000000e+00> : vector<48x48xf32>
    %53 = tpu.matmul %38, %45, %cst_19 {dimension_numbers = #tpu.dot_dimension_numbers<[1], [1], [0], [0], [0, 0, 1, 0], [], []>} : vector<48x16xf32>, vector<48x16xf32>, vector<48x48xf32> -> vector<48x48xf32>
    %c0_20 = arith.constant 0 : index
    %c0_21 = arith.constant 0 : index
    %54 = vector.load %arg2[%c0_20, %c0_21] : memref<48x48xf32, #tpu.memory_space<vmem>>, vector<48x48xf32>
    %55 = arith.addf %53, %54 : vector<48x48xf32>
    %cst_22 = arith.constant dense<0xFF800000> : vector<48xf32>
    %56 = vector.multi_reduction <maximumf>, %55, %cst_22 [1] : vector<48x48xf32> to vector<48xf32>
    %57 = vector.shape_cast %56 : vector<48xf32> to vector<48x1xf32>
    %58 = vector.broadcast %57 : vector<48x1xf32> to vector<48x48xf32>
    %59 = arith.subf %55, %58 : vector<48x48xf32>
    %60 = math.exp %59 : vector<48x48xf32>
    %cst_23 = arith.constant dense<0.000000e+00> : vector<48xf32>
    %61 = vector.multi_reduction <add>, %60, %cst_23 [1] : vector<48x48xf32> to vector<48xf32>
    %62 = vector.shape_cast %61 : vector<48xf32> to vector<48x1xf32>
    %63 = tpu.reciprocal %62 {approx = true} : vector<48x1xf32> -> vector<48x1xf32>
    %64 = arith.mulf %62, %63 : vector<48x1xf32>
    %cst_24 = arith.constant 2.000000e+00 : f32
    %65 = vector.broadcast %cst_24 : f32 to vector<48x1xf32>
    %66 = arith.subf %65, %64 : vector<48x1xf32>
    %67 = arith.mulf %63, %66 : vector<48x1xf32>
    %68 = vector.broadcast %67 : vector<48x1xf32> to vector<48x48xf32>
    %69 = arith.mulf %60, %68 : vector<48x48xf32>
    %cst_25 = arith.constant dense<0.000000e+00> : vector<48x16xf32>
    %70 = tpu.matmul %69, %52, %cst_25 {dimension_numbers = #tpu.dot_dimension_numbers<[1], [0], [0], [1], [0, 0, 1, 1], [], []>} : vector<48x48xf32>, vector<48x16xf32>, vector<48x16xf32> -> vector<48x16xf32>
    %71 = vector.extract_strided_slice %70 {offsets = [0, 0], sizes = [8, 16], strides = [1, 1]} : vector<48x16xf32> to vector<8x16xf32>
    %c0_26 = arith.constant 0 : index
    %c0_27 = arith.constant 0 : index
    %72 = vector.load %arg6[%c0_26, %c0_27] : memref<96x96xf32, #tpu.memory_space<vmem>>, vector<16x96xf32>
    %cst_28 = arith.constant dense<0.000000e+00> : vector<8x96xf32>
    %73 = tpu.matmul %71, %72, %cst_28 {dimension_numbers = #tpu.dot_dimension_numbers<[1], [0], [0], [1], [0, 0, 1, 1], [], []>} : vector<8x16xf32>, vector<16x96xf32>, vector<8x96xf32> -> vector<8x96xf32>
    %74 = vector.extract_strided_slice %70 {offsets = [8, 0], sizes = [8, 16], strides = [1, 1]} : vector<48x16xf32> to vector<8x16xf32>
    %c16 = arith.constant 16 : index
    %c0_29 = arith.constant 0 : index
    %75 = vector.load %arg6[%c16, %c0_29] : memref<96x96xf32, #tpu.memory_space<vmem>>, vector<16x96xf32>
    %cst_30 = arith.constant dense<0.000000e+00> : vector<8x96xf32>
    %76 = tpu.matmul %74, %75, %cst_30 {dimension_numbers = #tpu.dot_dimension_numbers<[1], [0], [0], [1], [0, 0, 1, 1], [], []>} : vector<8x16xf32>, vector<16x96xf32>, vector<8x96xf32> -> vector<8x96xf32>
    %77 = arith.addf %73, %76 : vector<8x96xf32>
    %78 = vector.extract_strided_slice %70 {offsets = [16, 0], sizes = [8, 16], strides = [1, 1]} : vector<48x16xf32> to vector<8x16xf32>
    %c32 = arith.constant 32 : index
    %c0_31 = arith.constant 0 : index
    %79 = vector.load %arg6[%c32, %c0_31] : memref<96x96xf32, #tpu.memory_space<vmem>>, vector<16x96xf32>
    %cst_32 = arith.constant dense<0.000000e+00> : vector<8x96xf32>
    %80 = tpu.matmul %78, %79, %cst_32 {dimension_numbers = #tpu.dot_dimension_numbers<[1], [0], [0], [1], [0, 0, 1, 1], [], []>} : vector<8x16xf32>, vector<16x96xf32>, vector<8x96xf32> -> vector<8x96xf32>
    %81 = arith.addf %77, %80 : vector<8x96xf32>
    %82 = vector.extract_strided_slice %70 {offsets = [24, 0], sizes = [8, 16], strides = [1, 1]} : vector<48x16xf32> to vector<8x16xf32>
    %c48 = arith.constant 48 : index
    %c0_33 = arith.constant 0 : index
    %83 = vector.load %arg6[%c48, %c0_33] : memref<96x96xf32, #tpu.memory_space<vmem>>, vector<16x96xf32>
    %cst_34 = arith.constant dense<0.000000e+00> : vector<8x96xf32>
    %84 = tpu.matmul %82, %83, %cst_34 {dimension_numbers = #tpu.dot_dimension_numbers<[1], [0], [0], [1], [0, 0, 1, 1], [], []>} : vector<8x16xf32>, vector<16x96xf32>, vector<8x96xf32> -> vector<8x96xf32>
    %85 = arith.addf %81, %84 : vector<8x96xf32>
    %86 = vector.extract_strided_slice %70 {offsets = [32, 0], sizes = [8, 16], strides = [1, 1]} : vector<48x16xf32> to vector<8x16xf32>
    %c64 = arith.constant 64 : index
    %c0_35 = arith.constant 0 : index
    %87 = vector.load %arg6[%c64, %c0_35] : memref<96x96xf32, #tpu.memory_space<vmem>>, vector<16x96xf32>
    %cst_36 = arith.constant dense<0.000000e+00> : vector<8x96xf32>
    %88 = tpu.matmul %86, %87, %cst_36 {dimension_numbers = #tpu.dot_dimension_numbers<[1], [0], [0], [1], [0, 0, 1, 1], [], []>} : vector<8x16xf32>, vector<16x96xf32>, vector<8x96xf32> -> vector<8x96xf32>
    %89 = arith.addf %85, %88 : vector<8x96xf32>
    %90 = vector.extract_strided_slice %70 {offsets = [40, 0], sizes = [8, 16], strides = [1, 1]} : vector<48x16xf32> to vector<8x16xf32>
    %c80 = arith.constant 80 : index
    %c0_37 = arith.constant 0 : index
    %91 = vector.load %arg6[%c80, %c0_37] : memref<96x96xf32, #tpu.memory_space<vmem>>, vector<16x96xf32>
    %cst_38 = arith.constant dense<0.000000e+00> : vector<8x96xf32>
    %92 = tpu.matmul %90, %91, %cst_38 {dimension_numbers = #tpu.dot_dimension_numbers<[1], [0], [0], [1], [0, 0, 1, 1], [], []>} : vector<8x16xf32>, vector<16x96xf32>, vector<8x96xf32> -> vector<8x96xf32>
    %93 = arith.addf %89, %92 : vector<8x96xf32>
    %c0_39 = arith.constant 0 : index
    %c0_40 = arith.constant 0 : index
    %94 = vector.load %arg7[%c0_39, %c0_40] : memref<1x96xf32, #tpu.memory_space<vmem>>, vector<1x96xf32>
    %95 = vector.broadcast %94 : vector<1x96xf32> to vector<8x96xf32>
    %96 = arith.addf %93, %95 : vector<8x96xf32>
    %97 = arith.addf %0, %96 : vector<8x96xf32>
    %c0_41 = arith.constant 0 : index
    %c0_42 = arith.constant 0 : index
    %98 = vector.load %arg8[%c0_41, %c0_42] : memref<1x96xf32, #tpu.memory_space<vmem>>, vector<1x96xf32>
    %c0_43 = arith.constant 0 : index
    %c0_44 = arith.constant 0 : index
    %99 = vector.load %arg9[%c0_43, %c0_44] : memref<1x96xf32, #tpu.memory_space<vmem>>, vector<1x96xf32>
    %cst_45 = arith.constant dense<0.000000e+00> : vector<8xf32>
    %100 = vector.multi_reduction <add>, %97, %cst_45 [1] : vector<8x96xf32> to vector<8xf32>
    %101 = vector.shape_cast %100 : vector<8xf32> to vector<8x1xf32>
    %cst_46 = arith.constant 9.600000e+01 : f32
    %102 = vector.broadcast %cst_46 : f32 to vector<8x1xf32>
    %103 = arith.divf %101, %102 : vector<8x1xf32>
    %104 = vector.broadcast %103 : vector<8x1xf32> to vector<8x96xf32>
    %105 = arith.subf %97, %104 : vector<8x96xf32>
    %106 = arith.mulf %105, %105 : vector<8x96xf32>
    %cst_47 = arith.constant dense<0.000000e+00> : vector<8xf32>
    %107 = vector.multi_reduction <add>, %106, %cst_47 [1] : vector<8x96xf32> to vector<8xf32>
    %108 = vector.shape_cast %107 : vector<8xf32> to vector<8x1xf32>
    %cst_48 = arith.constant 9.600000e+01 : f32
    %109 = vector.broadcast %cst_48 : f32 to vector<8x1xf32>
    %110 = arith.divf %108, %109 : vector<8x1xf32>
    %cst_49 = arith.constant 9.99999974E-6 : f32
    %111 = vector.broadcast %cst_49 : f32 to vector<8x1xf32>
    %112 = arith.addf %110, %111 : vector<8x1xf32>
    %113 = math.rsqrt %112 : vector<8x1xf32>
    %114 = vector.broadcast %113 : vector<8x1xf32> to vector<8x96xf32>
    %115 = arith.mulf %105, %114 : vector<8x96xf32>
    %116 = vector.broadcast %98 : vector<1x96xf32> to vector<8x96xf32>
    %117 = arith.mulf %115, %116 : vector<8x96xf32>
    %118 = vector.broadcast %99 : vector<1x96xf32> to vector<8x96xf32>
    %119 = arith.addf %117, %118 : vector<8x96xf32>
    %c0_50 = arith.constant 0 : index
    %c0_51 = arith.constant 0 : index
    %120 = vector.load %arg10[%c0_50, %c0_51] : memref<96x384xf32, #tpu.memory_space<vmem>>, vector<96x384xf32>
    %cst_52 = arith.constant dense<0.000000e+00> : vector<8x384xf32>
    %121 = tpu.matmul %119, %120, %cst_52 {dimension_numbers = #tpu.dot_dimension_numbers<[1], [0], [0], [1], [0, 0, 1, 1], [], []>} : vector<8x96xf32>, vector<96x384xf32>, vector<8x384xf32> -> vector<8x384xf32>
    %c0_53 = arith.constant 0 : index
    %c0_54 = arith.constant 0 : index
    %122 = vector.load %arg11[%c0_53, %c0_54] : memref<1x384xf32, #tpu.memory_space<vmem>>, vector<1x384xf32>
    %123 = vector.broadcast %122 : vector<1x384xf32> to vector<8x384xf32>
    %124 = arith.addf %121, %123 : vector<8x384xf32>
    %cst_55 = arith.constant 0.000000e+00 : f32
    %125 = vector.broadcast %cst_55 : f32 to vector<8x384xf32>
    %126 = arith.maximumf %124, %125 : vector<8x384xf32>
    %c0_56 = arith.constant 0 : index
    %c0_57 = arith.constant 0 : index
    %127 = vector.load %arg12[%c0_56, %c0_57] : memref<384x96xf32, #tpu.memory_space<vmem>>, vector<384x96xf32>
    %cst_58 = arith.constant dense<0.000000e+00> : vector<8x96xf32>
    %128 = tpu.matmul %126, %127, %cst_58 {dimension_numbers = #tpu.dot_dimension_numbers<[1], [0], [0], [1], [0, 0, 1, 1], [], []>} : vector<8x384xf32>, vector<384x96xf32>, vector<8x96xf32> -> vector<8x96xf32>
    %c0_59 = arith.constant 0 : index
    %c0_60 = arith.constant 0 : index
    %129 = vector.load %arg13[%c0_59, %c0_60] : memref<1x96xf32, #tpu.memory_space<vmem>>, vector<1x96xf32>
    %130 = vector.broadcast %129 : vector<1x96xf32> to vector<8x96xf32>
    %131 = arith.addf %128, %130 : vector<8x96xf32>
    %132 = arith.addf %97, %131 : vector<8x96xf32>
    %c0_61 = arith.constant 0 : index
    %c0_62 = arith.constant 0 : index
    %133 = vector.load %arg14[%c0_61, %c0_62] : memref<8x96xf32, #tpu.memory_space<vmem>>, vector<8x96xf32>
    tpu.vector_store %arg14[%c0_61, %c0_62], %132 {strides = array<i32>} : memref<8x96xf32, #tpu.memory_space<vmem>>, vector<8x96xf32>,
    return
  }
  func.func @transform_0(%arg0: i32) -> (i32, i32) {
    %c0_i32 = arith.constant 0 : i32
    %c0_i32_0 = arith.constant 0 : i32
    return %arg0, %c0_i32 : i32, i32
  }
  func.func @transform_1(%arg0: i32) -> (i32, i32) {
    %c0_i32 = arith.constant 0 : i32
    %c0_i32_0 = arith.constant 0 : i32
    %c0_i32_1 = arith.constant 0 : i32
    return %c0_i32, %c0_i32_0 : i32, i32
  }
  func.func @transform_2(%arg0: i32) -> (i32, i32) {
    %c0_i32 = arith.constant 0 : i32
    %c0_i32_0 = arith.constant 0 : i32
    %c0_i32_1 = arith.constant 0 : i32
    return %c0_i32, %c0_i32_0 : i32, i32
  }
  func.func @transform_3(%arg0: i32) -> (i32, i32) {
    %c0_i32 = arith.constant 0 : i32
    %c0_i32_0 = arith.constant 0 : i32
    %c0_i32_1 = arith.constant 0 : i32
    return %c0_i32, %c0_i32_0 : i32, i32
  }
  func.func @transform_4(%arg0: i32) -> (i32, i32, i32) {
    %c0_i32 = arith.constant 0 : i32
    %c0_i32_0 = arith.constant 0 : i32
    %c0_i32_1 = arith.constant 0 : i32
    %c0_i32_2 = arith.constant 0 : i32
    return %c0_i32, %c0_i32_0, %c0_i32_1 : i32, i32, i32
  }
  func.func @transform_5(%arg0: i32) -> (i32, i32) {
    %c0_i32 = arith.constant 0 : i32
    %c0_i32_0 = arith.constant 0 : i32
    %c0_i32_1 = arith.constant 0 : i32
    return %c0_i32, %c0_i32_0 : i32, i32
  }
  func.func @transform_6(%arg0: i32) -> (i32, i32) {
    %c0_i32 = arith.constant 0 : i32
    %c0_i32_0 = arith.constant 0 : i32
    %c0_i32_1 = arith.constant 0 : i32
    return %c0_i32, %c0_i32_0 : i32, i32
  }
  func.func @transform_7(%arg0: i32) -> (i32, i32) {
    %c0_i32 = arith.constant 0 : i32
    %c0_i32_0 = arith.constant 0 : i32
    %c0_i32_1 = arith.constant 0 : i32
    return %c0_i32, %c0_i32_0 : i32, i32
  }
  func.func @transform_8(%arg0: i32) -> (i32, i32) {
    %c0_i32 = arith.constant 0 : i32
    %c0_i32_0 = arith.constant 0 : i32
    %c0_i32_1 = arith.constant 0 : i32
    return %c0_i32, %c0_i32_0 : i32, i32
  }
  func.func @transform_9(%arg0: i32) -> (i32, i32) {
    %c0_i32 = arith.constant 0 : i32
    %c0_i32_0 = arith.constant 0 : i32
    %c0_i32_1 = arith.constant 0 : i32
    return %c0_i32, %c0_i32_0 : i32, i32
  }
  func.func @transform_10(%arg0: i32) -> (i32, i32) {
    %c0_i32 = arith.constant 0 : i32
    %c0_i32_0 = arith.constant 0 : i32
    %c0_i32_1 = arith.constant 0 : i32
    return %c0_i32, %c0_i32_0 : i32, i32
  }
  func.func @transform_11(%arg0: i32) -> (i32, i32) {
    %c0_i32 = arith.constant 0 : i32
    %c0_i32_0 = arith.constant 0 : i32
    %c0_i32_1 = arith.constant 0 : i32
    return %c0_i32, %c0_i32_0 : i32, i32
  }
  func.func @transform_12(%arg0: i32) -> (i32, i32) {
    %c0_i32 = arith.constant 0 : i32
    %c0_i32_0 = arith.constant 0 : i32
    %c0_i32_1 = arith.constant 0 : i32
    return %c0_i32, %c0_i32_0 : i32, i32
  }
  func.func @transform_13(%arg0: i32) -> (i32, i32) {
    %c0_i32 = arith.constant 0 : i32
    %c0_i32_0 = arith.constant 0 : i32
    return %arg0, %c0_i32 : i32, i32
  }
}

</mosaic_0001>

<bundles_post_ra>
// kernel: transformer_block.1
= control target key start
LH: loop header
LB: loop body
LE: loop exit
PB: predicated region body
PF: predicated region fallthrough
CT: control target
= control target key end

     0   :  { %s3703_s0 = inlined_call_operand.hbm [shape: f32[16,96], index: 0, kind: input, shape index: {}]   ;;  %s3704_s1 = inlined_call_operand.hbm [shape: f32[48,48], index: 1, kind: input, shape index: {}]   ;;  %s3705_s2 = inlined_call_operand.hbm [shape: f32[1,96], index: 2, kind: input, shape index: {}]   ;;  %s3706_s3 = inlined_call_operand.vmem [shape: f32[1,96], index: 3, kind: input, shape index: {}]   ;;  %s3707_s4 = inlined_call_operand.vmem [shape: f32[3,96,96], index: 4, kind: input, shape index: {}]   ;;  %s3708_s5 = inlined_call_operand.vmem [shape: f32[96,96], index: 5, kind: input, shape index: {}]   ;;  %s3709_s6 = inlined_call_operand.vmem [shape: f32[1,96], index: 6, kind: input, shape index: {}]   ;;  %s3710_s7 = inlined_call_operand.vmem [shape: f32[1,96], index: 7, kind: input, shape index: {}]   ;;  %s3711_s8 = inlined_call_operand.vmem [shape: f32[1,96], index: 8, kind: input, shape index: {}]   ;;  %s3712_s9 = inlined_call_operand.vmem [shape: f32[96,384], index: 9, kind: input, shape index: {}]   ;;  %s3713_s10 = inlined_call_operand.vmem [shape: f32[1,384], index: 10, kind: input, shape index: {}]   ;;  %s3714_s11 = inlined_call_operand.vmem [shape: f32[384,96], index: 11, kind: input, shape index: {}]   ;;  %s3715_s12 = inlined_call_operand.vmem [shape: f32[1,96], index: 12, kind: input, shape index: {}]   ;;  %s3716_s13 = inlined_call_operand.hbm [shape: f32[16,96], index: 13, kind: output, shape index: {}]  }
   0x1   :  { %3727 = sst [smem:[#allocation18_spill]] %s3704_s1 }
   0x2   :  { %3728 = sst [smem:[#allocation19_spill]] %s3705_s2 }
   0x3   :  { %18 = vsyncpa [#allocation3], 0 }
   0x4   :  { %20 = vsyncpa [#allocation3 + $0x1], 0 }
   0x5   :  { %21 = vsyncpa [#allocation6], 0 }
   0x6   :  { %22 = vsyncpa [#allocation4], 0 }
   0x7   :  { %24 = vsyncpa [#allocation4 + $0x1], 0  ;;  %s2905_s25 = smov 0   ;;  %s2907_s26 = smov 0  }
   0x8   :  { %s2909_s27 = smov 0   ;;  %s2911_s28 = smov 0  }
   0x9 LB: > { %3729 = sst [smem:[#allocation12_spill]] %s2808_s25  ;;  %s2926_s29 = sadd.s32 4294967295, %s2820_s28   ;;  %s2820_s28 = sphi %s2911_s28, %s3754_s28   ;;  %s2816_s27 = sphi %s2909_s27, %s3756_s27   ;;  %s2812_s26 = sphi %s2907_s26, %s3758_s26   ;;  %s2808_s25 = sphi %s2905_s25, %s3757_s25  }
   0xa   : > { %3730 = sst [smem:[#allocation13_spill]] %s2816_s27  ;;  %s2120_s30 = sadd.s32 4294967294, %s2820_s28  }
   0xb   : > { %3731 = sst [smem:[#allocation14_spill]] %s2820_s28  ;;  %p50_p0 = scmp.ne.s32.totalorder %s2812_s26, %s2808_s25 }
   0xc   : > { %p3717_p1 = scmp.eq.s32.totalorder %s2926_s29, 0  ;;  %p332_p3 = scmp.eq.s32.totalorder %s2120_s30, 1 }
   0xd   : > { %p2121_p5 = scmp.ge.s32.totalorder %s2820_s28, 1  ;;  %p339_p7 = scmp.lt.s32.totalorder %s2820_s28, 3 }
   0xe   : > { %p2935_p4 = por %p3717_p1, %p50_p0  ;;  %p2940_p6 = por %p332_p3, %p50_p0 }
   0xf   : > { %p2945_p8 = pnand %p2121_p5, %p339_p7  ;;  %s2822_s17 = smov [#allocation5]  }
  0x10   : > { %s3732_s14 = scalar_select %p2935_p4, 1, 0 }
  0x11   : > { %s3733_s15 = scalar_select %p2940_p6, 1, 0 }
  0x12   : > { %s3735_s16 = scalar_select %p2945_p8, 1, 0 }
  0x13   : > { %3734 = sst [smem:[#allocation15_spill]] %s3733_s15  ;;  %s351_s18 = sshll.u32 %s2822_s17, 4  ;;  %s352_s18 = int_to_ptr.vmem [resolvable:$true] %s351_s18 }
  0x14   : > { %p2580_p9 = pneg %p2945_p8  ;;  %s2823_s20 = smov [#allocation7]  }
  0x15   : > { %s365_s21 = sshll.u32 %s2823_s20, 4  ;;  %s2683_s22 = scalar_lea.vmem %s352_s18, 768  ;;  %s366_s21 = int_to_ptr.vmem [resolvable:$true] %s365_s21 }
  0x16   : > { %p2954_p11 = pnand %p2580_p9, %p3717_p1  ;;  %p2684_p13 = scmp.ne.s32.totalorder %s352_s18, %s2683_s22 }
  0x17   : > { %p2691_p5 = scmp.lt.s32.totalorder %s352_s18, %s352_s18  ;;  %p2692_p7 = scmp.lt.s32.totalorder %s2683_s22, %s2683_s22 }
  0x18   : > { %p2674_p12 = pneg %p2954_p11 }
  0x19   : > { %p2693_p10 = por %p2692_p7, %p2691_p5 }
  0x1a   : > { %p2686_p0 = pnand %p2684_p13, %p2674_p12 }
  0x1c   : > { %p2687_p3 = pneg %p2686_p0 }
  0x1e   : > { %p2694_p9 = pnand %p2693_p10, %p2687_p3 }
  0x20   : > { %2697 = shalt.err (!%p2694_p9)
}
  0x21   : > { %s2824_s23 = smov 128   ;;  %s2825_s24 = smov 8  }
  0x22   : > { %s3737_s1 = sld [smem:[#allocation18_spill]]  ;;  %s2709_s20 = scalar_lea.vmem %s366_s21, 16 }
  0x23   : > { %p2710_p1 = scmp.ne.s32.totalorder %s366_s21, %s2709_s20  ;;  %s2716_s15 = scalar_lea.vmem %s366_s21, 32 }
  0x24   : > { %p2717_p2 = scmp.lt.s32.totalorder %s366_s21, %s366_s21  ;;  %p2718_p5 = scmp.lt.s32.totalorder %s2716_s15, %s2709_s20 }
  0x25   : > { %p2712_p13 = pnand %p2710_p1, %p2674_p12 }
  0x26   : > { %p2719_p10 = por %p2718_p5, %p2717_p2 }
  0x27   : > { %p2713_p0 = pneg %p2712_p13 }
  0x28   : > { %2583 = dma.hbm_to_vmem [thread:$0]  (!%p2954_p11), %s3737_s1, 768, %s352_s18, [#allocation6], %s2824_s23, %s2824_s23, %s2825_s24  }
  0x29   : > { %p2720_p3 = pnand %p2719_p10, %p2713_p0 }
  0x2b   : > { %2723 = shalt.err (!%p2720_p3)
}
  0x2c   : > { %s3738_s2 = sld [smem:[#allocation19_spill]]  ;;  %s2977_s15 = sadd.s32 1, %s2820_s28  }
  0x2d   : > { %3739 = sst [smem:[#allocation16_spill]] %s2977_s15  ;;  %s37_s18 = sadd.s32 1, %s2816_s27 }
  0x2e   : > { %s34_s19 = ssub.s32 %s2820_s28, %s2977_s15  ;;  %p44_p1 = scmp.ne.s32.totalorder %s2816_s27, %s2812_s26 }
  0x2f   : > { %p35_p2 = scmp.eq.s32.totalorder %s34_s19, 0  ;;  %p45_p12 = scmp.eq.s32.totalorder %s2820_s28, 0 }
  0x30   : > { %p3740_p7 = scmp.eq.s32.totalorder %s2926_s29, 1  ;;  %p2597_p13 = scmp.lt.s32.totalorder %s2820_s28, 2 }
  0x31   : > { %s2993_s23 = scalar_select %p35_p2, %s2816_s27, %s37_s18  }
  0x32   : > { %2586 = dma.hbm_to_vmem [thread:$0]  (!%p2954_p11), %s3738_s2, 16, %s366_s21, [#allocation6]  }
  0x33   : > { %p2987_p9 = por %p3740_p7, %p44_p1  ;;  %3742 = sst [smem:[#allocation17_spill]] %s2993_s23 }
  0x34   : > { %p46_p0 = por %p45_p12, %p44_p1  ;;  %s406_s24 = sand.u32 1, %s2816_s27  }
  0x35   : > { %s3741_s25 = scalar_select %p2987_p9, 1, 0 }
  0x36   : > { %s2125_s30 = sshll.u32 %s406_s24, 3  ;;  %s2126_s21 = sshll.u32 %s2820_s28, 7 }
  0x37   : > { %s3000_s22 = scalar_lea.hbm %s3703_s0, %s2126_s21  ;;  %s410_s19 = scalar_lea.vmem [#allocation2], %s2125_s30 }
  0x38   : > { %s417_s1 = sshll.u32 %s410_s19, 4  ;;  %p3002_p11 = pnand %p2597_p13, %p46_p0  ;;  %s418_s1 = int_to_ptr.vmem [resolvable:$true] %s417_s1 }
  0x39   : > { %s407_s18 = scalar_lea.sflag [#allocation3], %s406_s24  ;;  %s2724_s23 = scalar_lea.hbm %s3000_s22, 128 }
  0x3a   : > { %p2725_p5 = scmp.ne.s32.totalorder %s3000_s22, %s2724_s23  ;;  %p2726_p10 = pneg %p3002_p11 }
  0x3b   : > { %s2729_s20 = scalar_lea.hbm %s3703_s0, 256  ;;  %p2730_p2 = scmp.lt.s32.totalorder %s3000_s22, %s3703_s0 }
  0x3c   : > { %p2727_p3 = pnand %p2726_p10, %p2725_p5  ;;  %p2731_p12 = scmp.lt.s32.totalorder %s2729_s20, %s2724_s23 }
  0x3e   : > { %p2728_p1 = pneg %p2727_p3  ;;  %p2732_p7 = por %p2731_p12, %p2730_p2 }
  0x40   : > { %p2733_p13 = pnand %p2732_p7, %p2728_p1 }
  0x42   : > { %2736 = shalt.err (!%p2733_p13)
}
  0x43   : > { %s2737_s19 = scalar_lea.vmem %s418_s1, 128  ;;  %s2826_s24 = smov [#allocation2]  }
  0x44   : > { %p2738_p0 = scmp.ne.s32.totalorder %s418_s1, %s2737_s19  ;;  %s2742_s15 = sshll.u32 %s2826_s24, 4  ;;  %s2743_s15 = int_to_ptr.vmem [resolvable:$false] %s2742_s15 }
  0x45   : > { %s2744_s28 = scalar_lea.vmem %s2743_s15, 256  ;;  %p2745_p5 = scmp.lt.s32.totalorder %s418_s1, %s2743_s15 }
  0x46   : > { %p2740_p6 = pnand %p2738_p0, %p2726_p10  ;;  %p2746_p3 = scmp.lt.s32.totalorder %s2744_s28, %s2737_s19 }
  0x48   : > { %p2741_p9 = pneg %p2740_p6  ;;  %p2747_p4 = por %p2746_p3, %p2745_p5 }
  0x4a   : > { %p2748_p8 = pnand %p2747_p4, %p2741_p9 }
  0x4c   : > { %2751 = shalt.err (!%p2748_p8)
}
  0x4d   : > { %2590 = dma.hbm_to_vmem [thread:$0]  (!%p3002_p11), %s3000_s22, 128, %s418_s1, %s407_s18  }
  0x4e   : > { %p3744_p1 = scmp.ne.s32.totalorder %s3735_s16, 0 }
  0x4f   : > { %s3023_s27 = sand.u32 (!%p3744_p1), 1, %s2812_s26   ;;  %p3745_p4 = scmp.ne.s32.totalorder (!%p3744_p1), %s3732_s14, 0 }
  0x50   : > { %426 = sbr.rel (%p3744_p1) target bundleno = 2378 (0x94a), region = 72  ;;  %s2128_s23 = sshll.u32 (!%p3744_p1), %s3023_s27, 3 }
  0x51   : > { %s429_s15 = scalar_lea.sflag (!%p3744_p1), [#allocation3], %s3023_s27  ;;  %s432_s28 = scalar_lea.vmem (!%p3744_p1), [#allocation2], %s2128_s23 }
  0x55   : > { %2795 = dma.done.wait (%p3745_p4), %s429_s15, 128  }
  0x56   : > { %2797 = vsyncadd (%p3745_p4), %s429_s15, 4294967168  ;;  %p3746_p6 = scmp.eq.s32.totalorder %s2926_s29, 0 }
  0x58   : > { %2799 = dma.done.wait (%p3746_p6), [#allocation6], 784   ;;  %p3747_p8 = pmov %p3746_p6 }
  0x59   : > { %vm486_vm0 = vcmask 785408   ;;  %v3037_v0 = vld [vmem:[%s432_s28] sm:$0xff]  ;;  %v2827_v2 = vmov 0.0   ;;  %v526_v8 = vld [vmem:[%s3707_s4 + $0x58] sm:$0xff]  ;;  %v525_v10 = vld [vmem:[%s3707_s4 + $0x50] sm:$0xff]  ;;  %vm2828_vm1 = vmmov 0  }
  0x5a   : > { %2801 = vsyncadd (%p3747_p8), [#allocation6], 4294966512  ;;  %v487_v1 = vsel %vm486_vm0, %v3037_v0, 0.0  ;;  %2341 = vmatprep.subr.mxu0 %v2827_v2  ;;  %2368 = vmatprep.subr.mxu1 %v2827_v2  ;;  %v2146_v9 = vld [vmem:[%s3707_s4 + $0xb8] sm:$0xff]  ;;  %v2145_v11 = vld [vmem:[%s3707_s4 + $0xb0] sm:$0xff]  ;;  %vm810_vm2 = vcmask 130048  }
  0x5b   : > { %488 = vadd.xlane.f32.xlu0 %v487_v1  ;;  %2342 = vmatpush3.msra.mxu0 %v526_v8  ;;  %v524_v12 = vld [vmem:[%s3707_s4 + $0x48] sm:$0xff]  ;;  %v523_v14 = vld [vmem:[%s3707_s4 + $0x40] sm:$0xff]  ;;  %v522_v16 = vld [vmem:[%s3707_s4 + $0x38] sm:$0xff]  ;;  %s2829_s22 = smov 80   ;;  %s2830_s18 = smov 48   ;;  %vm930_vm3 = vcmask 392192  }
  0x5c   : > { %2343 = vmatprep.subr.mxu0 %v2827_v2  ;;  %2369 = vmatpush3.msra.mxu1 %v2146_v9  ;;  %v2144_v13 = vld [vmem:[%s3707_s4 + $0xa8] sm:$0xff]  ;;  %v2143_v15 = vld [vmem:[%s3707_s4 + $0xa0] sm:$0xff]  ;;  %v2142_v17 = vld [vmem:[%s3707_s4 + $0x98] sm:$0xff]  ;;  %s2831_s21 = smov 64   ;;  %s2832_s17 = smov 96  }
  0x5d   : > { %2344 = vmatpush3.msra.mxu0 %v525_v10  ;;  %2370 = vmatprep.subr.mxu1 %v2827_v2  ;;  %v521_v18 = vld [vmem:[%s3707_s4 + $0x30] sm:$0xff]  ;;  %v520_v20 = vld [vmem:[%s3707_s4 + $0x28] sm:$0xff]  ;;  %v519_v22 = vld [vmem:[%s3707_s4 + $0x20] sm:$0xff]  ;;  %s2833_s20 = smov 112   ;;  %s2192_s2 = sshll.u32 %s2926_s29, 7 }
  0x5e   : > { %2345 = vmatprep.subr.mxu0 %v2827_v2  ;;  %2371 = vmatpush3.msra.mxu1 %v2145_v11  ;;  %v2141_v19 = vld [vmem:[%s3707_s4 + $0x90] sm:$0xff]  ;;  %v2140_v21 = vld [vmem:[%s3707_s4 + $0x88] sm:$0xff]  ;;  %v2139_v23 = vld [vmem:[%s3707_s4 + $0x80] sm:$0xff]  ;;  %s482_s14 = scalar_lea.vmem [#allocation8], %s2128_s23  ;;  %p3748_p11 = scmp.ne.s32.totalorder %s3741_s25, 0 }
  0x5f   : > { %2346 = vmatpush3.msra.mxu0 %v524_v12  ;;  %2372 = vmatprep.subr.mxu1 %v2827_v2  ;;  %v518_v24 = vld [vmem:[%s3707_s4 + $0x18] sm:$0xff]  ;;  %v517_v26 = vld [vmem:[%s3707_s4 + $0x10] sm:$0xff]  ;;  %v516_v28 = vld [vmem:[%s3707_s4 + $0x8] sm:$0xff]  ;;  %s2031_s16 = sshll.u32 %s482_s14, 4  ;;  %s2834_s29 = smov [#allocation8]   ;;  %s2032_s16 = int_to_ptr.vmem [resolvable:$true] %s2031_s16 }
  0x60   : > { %2347 = vmatprep.subr.mxu0 %v2827_v2  ;;  %2373 = vmatpush3.msra.mxu1 %v2144_v13  ;;  %v2138_v25 = vld [vmem:[%s3707_s4 + $0x78] sm:$0xff]  ;;  %v2137_v27 = vld [vmem:[%s3707_s4 + $0x70] sm:$0xff]  ;;  %v2136_v29 = vld [vmem:[%s3707_s4 + $0x68] sm:$0xff]  ;;  %s2756_s30 = sshll.u32 %s2834_s29, 4  ;;  %s2757_s30 = int_to_ptr.vmem [resolvable:$false] %s2756_s30 }
  0x61   : > { %2348 = vmatpush3.msra.mxu0 %v523_v14  ;;  %2374 = vmatprep.subr.mxu1 %v2827_v2  ;;  %v515_v30 = vld [vmem:[%s3707_s4] sm:$0xff]  ;;  %v2159_v41 = vld [vmem:[%s3707_s4 + $0x118] sm:$0xff]  ;;  %v2158_v42 = vld [vmem:[%s3707_s4 + $0x110] sm:$0xff]  ;;  %s2758_s23 = scalar_lea.vmem %s2757_s30, 256  ;;  %p2759_p12 = scmp.lt.s32.totalorder %s2032_s16, %s2757_s30 }
  0x62   : > { %2349 = vmatprep.subr.mxu0 %v2827_v2  ;;  %2375 = vmatpush3.msra.mxu1 %v2143_v15  ;;  %v2135_v31 = vld [vmem:[%s3707_s4 + $0x60] sm:$0xff]  ;;  %v2157_v43 = vld [vmem:[%s3707_s4 + $0x108] sm:$0xff]  ;;  %v2155_v45 = vld [vmem:[%s3707_s4 + $0xf8] sm:$0xff] }
  0x63   : > { %2350 = vmatpush3.msra.mxu0 %v522_v16  ;;  %2376 = vmatprep.subr.mxu1 %v2827_v2  ;;  %v2132_v36 = vld [vmem:[#allocation7] ss:$0 sm:$0xff]  ;;  %v2154_v46 = vld [vmem:[%s3707_s4 + $0xf0] sm:$0xff]  ;;  %v2153_v47 = vld [vmem:[%s3707_s4 + $0xe8] sm:$0xff] }
  0x64   : > { %2351 = vmatprep.subr.mxu0 %v2827_v2  ;;  %2377 = vmatpush3.msra.mxu1 %v2142_v17  ;;  %v2133_v38 = vld [vmem:[%s3706_s3] ss:$0 sm:$0xff]  ;;  %v2151_v49 = vld [vmem:[%s3707_s4 + $0xd8] sm:$0xff]  ;;  %v2150_v50 = vld [vmem:[%s3707_s4 + $0xd0] sm:$0xff] }
  0x65   : > { %2352 = vmatpush3.msra.mxu0 %v521_v18  ;;  %2378 = vmatprep.subr.mxu1 %v2827_v2  ;;  %v2156_v44 = vld [vmem:[%s3707_s4 + $0x100] sm:$0xff]  ;;  %v2149_v51 = vld [vmem:[%s3707_s4 + $0xc8] sm:$0xff]  ;;  %v804_v9 = vld [vmem:[#allocation5] sm:$0xff] }
  0x66   : > { %2353 = vmatprep.subr.mxu0 %v2827_v2  ;;  %2379 = vmatpush3.msra.mxu1 %v2141_v19  ;;  %v2152_v48 = vld [vmem:[%s3707_s4 + $0xe0] sm:$0xff]  ;;  %v807_v12 = vld [vmem:[#allocation5 + $0x18] sm:$0xff] }
  0x67   : > { %2354 = vmatpush3.msra.mxu0 %v520_v20  ;;  %2380 = vmatprep.subr.mxu1 %v2827_v2  ;;  %v2148_v52 = vld [vmem:[%s3707_s4 + $0xc0] sm:$0xff]  ;;  %v809_v20 = vld [vmem:[#allocation5 + $0x28] sm:$0xff] }
  0x68   : > { %2355 = vmatprep.subr.mxu0 %v2827_v2  ;;  %2381 = vmatpush3.msra.mxu1 %v2140_v21  ;;  %v806_v16 = vld [vmem:[#allocation5 + $0x10] sm:$0xff] }
  0x69   : > { %2356 = vmatpush3.msra.mxu0 %v519_v22  ;;  %2382 = vmatprep.subr.mxu1 %v2827_v2 }
  0x6a   : > { %2357 = vmatprep.subr.mxu0 %v2827_v2  ;;  %2383 = vmatpush3.msra.mxu1 %v2139_v23  ;;  %v808_v23 = vld [vmem:[#allocation5 + $0x20] sm:$0xff] }
  0x6b   : > { %2358 = vmatpush3.msra.mxu0 %v518_v24  ;;  %2384 = vmatprep.subr.mxu1 %v2827_v2 }
  0x6c   : > { %2359 = vmatprep.subr.mxu0 %v2827_v2  ;;  %2385 = vmatpush3.msra.mxu1 %v2138_v25 }
  0x6d   : > { %2360 = vmatpush3.msra.mxu0 %v517_v26  ;;  %2386 = vmatprep.subr.mxu1 %v2827_v2 }
  0x6e   : > { %2361 = vmatprep.subr.mxu0 %v2827_v2  ;;  %2387 = vmatpush3.msra.mxu1 %v2137_v27 }
  0x6f   : > { %2362 = vmatpush3.msra.mxu0 %v516_v28  ;;  %2388 = vmatprep.subr.mxu1 %v2827_v2 }
  0x70   : > { %2363 = vmatprep.subr.mxu0 %v2827_v2  ;;  %2389 = vmatpush3.msra.mxu1 %v2136_v29 }
  0x71   : > { %2364 = vmatpush3.msra.mxu0 %v515_v30  ;;  %2390 = vmatprep.subr.mxu1 %v2827_v2 }
  0x72   : > { %2365 = vmatprep.mubr.msk.f32.mxu0 %vm2828_vm1, %v2827_v2  ;;  %2391 = vmatpush3.msra.mxu1 %v2135_v31 }
  0x73   : > { %2392 = vmatprep.mubr.msk.f32.mxu1 %vm2828_vm1, %v2827_v2  ;;  %2395 = vmatprep.subr.mxu0 %v2827_v2 }
  0xe4   : > { %v489_v3 = vpop.xlane.xlu0 %488 }
  0xe5   : > { %v491_v4 = vmul.f32 0.010416667, %v489_v3 }
  0xe7   : > { %v3044_v5 = vsub.f32 %v3037_v0, %v491_v4 }
  0xe9   : > { %v493_v6 = vmul.f32 %v3044_v5, %v3044_v5 }
  0xeb   : > { %v494_v7 = vsel %vm486_vm0, %v493_v6, 0.0 }
  0xec   : > { %495 = vadd.xlane.f32.xlu0 %v494_v7  ;;  %v805_v7 = vld [vmem:[#allocation5 + $0x8] sm:$0xff] }
 0x175   : > { %v496_v32 = vpop.xlane.xlu0 %495 }
 0x176   : > { %v497_v33 = vmul.f32 0.010416667, %v496_v32 }
 0x178   : > { %v498_v34 = vadd.f32 1e-05, %v497_v33 }
 0x17a   : > { %2644 = vrsqrt.f32 %v498_v34 }
 0x187   : > { %v2645_v35 = vpop.eup %2644 }
 0x188   : > { %v500_v37 = vmul.f32 %v2645_v35, %v3044_v5 }
 0x18a   : > { %v507_v39 = vmul.f32 %v2132_v36, %v500_v37 }
 0x18c   : > { %v514_v40 = vadd.f32 %v2133_v38, %v507_v39 }
 0x18e   : > { %2366 = vmatmul.mubr.msk.f32.vlgmr.msra.gmra.mxu0 %vm486_vm0, %v514_v40  ;;  %2393 = vmatmul.mubr.msk.f32.vlgmr.msra.gmra.mxu1 %vm486_vm0, %v514_v40 }
 0x18f   : > { %2396 = vmatpush3.msra.mxu0 %v2159_v41  ;;  %2419 = vmatprep.mubr.msk.f32.mxu0 %vm2828_vm1, %v2827_v2 }
 0x190   : > { %2397 = vmatprep.subr.mxu0 %v2827_v2 }
 0x191   : > { %2398 = vmatpush3.msra.mxu0 %v2158_v42 }
 0x192   : > { %2399 = vmatprep.subr.mxu0 %v2827_v2 }
 0x193   : > { %2400 = vmatpush3.msra.mxu0 %v2157_v43 }
 0x194   : > { %2401 = vmatprep.subr.mxu0 %v2827_v2 }
 0x195   : > { %2402 = vmatpush3.msra.mxu0 %v2156_v44 }
 0x196   : > { %2403 = vmatprep.subr.mxu0 %v2827_v2 }
 0x197   : > { %2404 = vmatpush3.msra.mxu0 %v2155_v45 }
 0x198   : > { %2405 = vmatprep.subr.mxu0 %v2827_v2 }
 0x199   : > { %2406 = vmatpush3.msra.mxu0 %v2154_v46 }
 0x19a   : > { %2407 = vmatprep.subr.mxu0 %v2827_v2 }
 0x19b   : > { %2408 = vmatpush3.msra.mxu0 %v2153_v47 }
 0x19c   : > { %2409 = vmatprep.subr.mxu0 %v2827_v2 }
 0x19d   : > { %2410 = vmatpush3.msra.mxu0 %v2152_v48 }
 0x19e   : > { %2411 = vmatprep.subr.mxu0 %v2827_v2 }
 0x19f   : > { %2412 = vmatpush3.msra.mxu0 %v2151_v49 }
 0x1a0   : > { %2413 = vmatprep.subr.mxu0 %v2827_v2 }
 0x1a1   : > { %2414 = vmatpush3.msra.mxu0 %v2150_v50 }
 0x1a2   : > { %2415 = vmatprep.subr.mxu0 %v2827_v2 }
 0x1a3   : > { %2416 = vmatpush3.msra.mxu0 %v2149_v51 }
 0x1a4   : > { %2417 = vmatprep.subr.mxu0 %v2827_v2 }
 0x1a5   : > { %2418 = vmatpush3.msra.mxu0 %v2148_v52 }
 0x1a6   : > { %2420 = vmatmul.mubr.msk.f32.vlgmr.msra.gmra.mxu0 %vm486_vm0, %v514_v40 }
 0x24e   : > { %v596_v53 = vpop.f32.mrf.mxu0  ;;  %v679_v54 = vpop.f32.mrf.mxu1 }
 0x24f   : > { %782 = vrot.lane.b32.xlu0 %v679_v54, %s2829_s22  ;;  %786 = vrot.lane.b32.xlu1 %v679_v54, %s2830_s18 }
 0x250   : > { %2434 = vmatprep.mubr.msk.f32.mxu1 %vm810_vm2, %v596_v53  ;;  %v2367_v55 = vpop.f32.mrf.mxu0  ;;  %v2394_v56 = vpop.f32.mrf.mxu1 }
 0x253   : > { %784 = vrot.lane.b32.xlu1 %v679_v54, %s2831_s21  ;;  %775 = vrot.lane.b32.xlu0 %v596_v53, %s2830_s18 }
 0x257   : > { %780 = vrot.lane.b32.xlu1 %v679_v54, %s2832_s17 }
 0x25b   : > { %778 = vrot.lane.b32.xlu1 %v679_v54, %s2833_s20 }
 0x25f   : > { %767 = vrot.lane.b32.xlu1 %v596_v53, %s2833_s20 }
 0x263   : > { %769 = vrot.lane.b32.xlu1 %v596_v53, %s2832_s17 }
 0x266   : > { %v3213_v57 = vpop.f32.mrf.mxu0 }
 0x267   : > { %771 = vrot.lane.b32.xlu1 %v596_v53, %s2829_s22 }
 0x268   : > { %v2421_v58 = vpop.f32.mrf.mxu0 }
 0x26b   : > { %773 = vrot.lane.b32.xlu1 %v596_v53, %s2831_s21 }
 0x2c1   : > { %v787_v59 = vpop.permute.xlu1 %786  ;;  %v783_v61 = vpop.permute.xlu0 %782 }
 0x2c2   : > { %2422 = vmatprep.subr.msk.mxu1 %vm810_vm2, %v787_v59 }
 0x2c3   : > { %2423 = vmatpush3.xpose.msk.msra.mxu1 %vm810_vm2, %v787_v59 }
 0x2c5   : > { %v785_v60 = vpop.permute.xlu1 %784  ;;  %v776_v6 = vpop.permute.xlu0 %775 }
 0x2c6   : > { %2424 = vmatprep.subr.msk.mxu1 %vm810_vm2, %v785_v60 }
 0x2c7   : > { %2425 = vmatpush3.xpose.msk.msra.mxu1 %vm810_vm2, %v785_v60 }
 0x2c8   : > { %2426 = vmatprep.subr.msk.mxu1 %vm810_vm2, %v783_v61 }
 0x2c9   : > { %v781_v62 = vpop.permute.xlu1 %780 }
 0x2cb   : > { %2427 = vmatpush3.xpose.msk.msra.mxu1 %vm810_vm2, %v783_v61 }
 0x2cc   : > { %2428 = vmatprep.subr.msk.mxu1 %vm810_vm2, %v781_v62 }
 0x2cd   : > { %v779_v63 = vpop.permute.xlu1 %778 }
 0x2cf   : > { %2429 = vmatpush3.xpose.msk.msra.mxu1 %vm810_vm2, %v781_v62 }
 0x2d0   : > { %2430 = vmatprep.subr.msk.mxu1 %vm810_vm2, %v779_v63 }
 0x2d1   : > { %v768_v1 = vpop.permute.xlu1 %767 }
 0x2d3   : > { %2431 = vmatpush3.xpose.msk.msra.mxu1 %vm810_vm2, %v779_v63 }
 0x2d4   : > { %2432 = vmatprep.subr.msk.mxu1 %vm810_vm2, %v679_v54 }
 0x2d5   : > { %v770_v3 = vpop.permute.xlu1 %769 }
 0x2d7   : > { %2433 = vmatpush3.xpose.msk.msra.mxu1 %vm810_vm2, %v679_v54 }
 0x2d8   : > { %2464 = vmatprep.subr.mxu1 %v2827_v2 }
 0x2d9   : > { %v772_v4 = vpop.permute.xlu1 %771 }
 0x2da   : > { %2435 = vmatmul.mubr.msk.f32.vlgmr.msra.gmra.mxu1 %vm810_vm2, %v768_v1 }
 0x2db   : > { %2437 = vmatprep.mubr.msk.f32.mxu1 %vm810_vm2, %v770_v3  ;;  %v1131_v3 = vld [vmem:[%s3708_s5 + $0x18] sm:$0xff] }
 0x2dc   : > { %2465 = vmatpush3.msra.mxu1 %v1131_v3 }
 0x2dd   : > { %v774_v5 = vpop.permute.xlu1 %773  ;;  %2466 = vmatprep.subr.mxu1 %v2827_v2 }
 0x2de   : > { %2438 = vmatmul.mubr.msk.f32.gmra.mxu1 %vm810_vm2, %v772_v4  ;;  %v1130_v4 = vld [vmem:[%s3708_s5 + $0x10] sm:$0xff] }
 0x2df   : > { %2440 = vmatprep.mubr.msk.f32.mxu1 %vm810_vm2, %v774_v5  ;;  %2467 = vmatpush3.msra.mxu1 %v1130_v4 }
 0x2e0   : > { %2471 = vmatprep.subr.mxu1 %v2827_v2 }
 0x2e2   : > { %2441 = vmatmul.mubr.msk.f32.gmra.mxu1 %vm810_vm2, %v776_v6 }
 0x2e3   : > { %2468 = vmatprep.mubr.msk.f32.mxu1 %vm2828_vm1, %v2827_v2 }
 0x39a   : > { %v2436_v8 = vpop.f32.mrf.mxu1 }
 0x39b   : > { %v907_v10 = vadd.f32 %v2436_v8, %v805_v7 }
 0x39c   : > { %v901_v11 = vpop.f32.mrf.mxu1 }
 0x39d   : > { %v902_v13 = vadd.f32 %v901_v11, %v804_v9  ;;  %v934_v14 = vsel %vm930_vm3, %v907_v10, -inf }
 0x39e   : > { %935 = vmax.xlane.f32.xlu0 %v934_v14  ;;  %v2439_v15 = vpop.f32.mrf.mxu1 }
 0x39f   : > { %v917_v17 = vadd.f32 %v2439_v15, %v807_v12  ;;  %v931_v18 = vsel %vm930_vm3, %v902_v13, -inf }
 0x3a0   : > { %v911_v19 = vpop.f32.mrf.mxu1  ;;  %932 = vmax.xlane.f32.xlu1 %v931_v18 }
 0x3a1   : > { %v912_v21 = vadd.f32 %v911_v19, %v806_v16  ;;  %v940_v26 = vsel %vm930_vm3, %v917_v17, -inf }
 0x3a2   : > { %v2442_v22 = vpop.f32.mrf.mxu1 }
 0x3a3   : > { %v927_v24 = vadd.f32 %v2442_v22, %v809_v20  ;;  %v937_v25 = vsel %vm930_vm3, %v912_v21, -inf }
 0x3a4   : > { %v921_v27 = vpop.f32.mrf.mxu1  ;;  %938 = vmax.xlane.f32.xlu0 %v937_v25  ;;  %941 = vmax.xlane.f32.xlu1 %v940_v26 }
 0x3a5   : > { %v922_v28 = vadd.f32 %v921_v27, %v808_v23  ;;  %v946_v30 = vsel %vm930_vm3, %v927_v24, -inf }
 0x3a7   : > { %v943_v29 = vsel %vm930_vm3, %v922_v28, -inf }
 0x3a8   : > { %944 = vmax.xlane.f32.xlu0 %v943_v29  ;;  %947 = vmax.xlane.f32.xlu1 %v946_v30  ;;  %v1355_v30 = vld [vmem:[%s3708_s5 + $0x38] sm:$0xff] }
 0x3b9   : > { %798 = vrot.lane.b32.xlu1 %v3213_v57, %s2831_s21  ;;  %s2029_s21 = scalar_lea.hbm %s3716_s13, %s2192_s2 }
 0x3bd   : > { %795 = vrot.lane.b32.xlu1 %v3213_v57, %s2829_s22 }
 0x3be   : > { %801 = vrot.lane.b32.xlu0 %v3213_v57, %s2830_s18 }
 0x427   : > { %v936_v31 = vpop.xlane.xlu0 %935 }
 0x428   : > { %v950_v32 = vsub.f32 %v907_v10, %v936_v31 }
 0x429   : > { %v933_v33 = vpop.xlane.xlu1 %932 }
 0x42a   : > { %v957_v34 = vmul.f32 1.442695, %v950_v32  ;;  %v949_v35 = vsub.f32 %v902_v13, %v933_v33 }
 0x42c   : > { %2646 = vpow2.f32 %v957_v34  ;;  %v955_v36 = vmul.f32 1.442695, %v949_v35 }
 0x42d   : > { %v939_v37 = vpop.xlane.xlu0 %938  ;;  %v942_v38 = vpop.xlane.xlu1 %941 }
 0x42e   : > { %2648 = vpow2.f32 %v955_v36  ;;  %v951_v39 = vsub.f32 %v912_v21, %v939_v37  ;;  %v952_v40 = vsub.f32 %v917_v17, %v942_v38 }
 0x430   : > { %v959_v41 = vmul.f32 1.442695, %v951_v39  ;;  %v961_v42 = vmul.f32 1.442695, %v952_v40 }
 0x431   : > { %v945_v43 = vpop.xlane.xlu0 %944  ;;  %v948_v44 = vpop.xlane.xlu1 %947 }
 0x432   : > { %2650 = vpow2.f32 %v959_v41  ;;  %v953_v45 = vsub.f32 %v922_v28, %v945_v43  ;;  %v954_v46 = vsub.f32 %v927_v24, %v948_v44  ;;  %v1354_v43 = vld [vmem:[%s3708_s5 + $0x30] sm:$0xff]  ;;  %v1129_v44 = vld [vmem:[%s3708_s5 + $0x8] sm:$0xff] }
 0x433   : > { %2652 = vpow2.f32 %v961_v42 }
 0x434   : > { %v963_v47 = vmul.f32 1.442695, %v953_v45  ;;  %v965_v48 = vmul.f32 1.442695, %v954_v46  ;;  %v1128_v46 = vld [vmem:[%s3708_s5] sm:$0xff] }
 0x435   : > { %v799_v49 = vpop.permute.xlu1 %798  ;;  %v802_v50 = vpop.permute.xlu0 %801 }
 0x436   : > { %2654 = vpow2.f32 %v963_v47  ;;  %2443 = vmatprep.subr.mxu0 %v802_v50 }
 0x437   : > { %2656 = vpow2.f32 %v965_v48  ;;  %2444 = vmatpush3.msra.mxu0 %v802_v50  ;;  %v1279_v48 = vld [vmem:[%s3708_s5 + $0x28] sm:$0xff]  ;;  %v1507_v50 = vld [vmem:[%s3708_s5 + $0x58] sm:$0xff] }
 0x438   : > { %2445 = vmatprep.subr.mxu0 %v799_v49 }
 0x439   : > { %v3249_v51 = vpop.eup %2646  ;;  %v796_v52 = vpop.permute.xlu1 %795  ;;  %2446 = vmatpush3.msra.mxu0 %v799_v49 }
 0x43a   : > { %2447 = vmatprep.subr.mxu0 %v796_v52  ;;  %v970_v53 = vsel %vm930_vm3, %v3249_v51, 0.0 }
 0x43b   : > { %v2649_v54 = vpop.eup %2648  ;;  %971 = vadd.xlane.f32.xlu1 %v970_v53  ;;  %2448 = vmatpush3.msra.mxu0 %v796_v52  ;;  %v1506_v53 = vld [vmem:[%s3708_s5 + $0x50] sm:$0xff] }
 0x43c   : > { %v967_v55 = vsel %vm930_vm3, %v2649_v54, 0.0 }
 0x43d   : > { %968 = vadd.xlane.f32.xlu0 %v967_v55  ;;  %v1431_v55 = vld [vmem:[%s3708_s5 + $0x48] sm:$0xff] }
 0x43f   : > { %v3254_v56 = vpop.eup %2650 }
 0x440   : > { %v3256_v58 = vpop.eup %2652  ;;  %v973_v59 = vsel %vm930_vm3, %v3254_v56, 0.0 }
 0x441   : > { %v976_v60 = vsel %vm930_vm3, %v3256_v58, 0.0  ;;  %974 = vadd.xlane.f32.xlu0 %v973_v59 }
 0x442   : > { %977 = vadd.xlane.f32.xlu1 %v976_v60 }
 0x443   : > { %v3262_v61 = vpop.eup %2654 }
 0x444   : > { %v3264_v62 = vpop.eup %2656  ;;  %v979_v63 = vsel %vm930_vm3, %v3262_v61, 0.0 }
 0x445   : > { %v982_v1 = vsel %vm930_vm3, %v3264_v62, 0.0  ;;  %980 = vadd.xlane.f32.xlu0 %v979_v63 }
 0x446   : > { %983 = vadd.xlane.f32.xlu1 %v982_v1 }
 0x457   : > { %789 = vrot.lane.b32.xlu1 %v3213_v57, %s2833_s20  ;;  %s2752_s20 = scalar_lea.vmem %s2032_s16, 128 }
 0x458   : > { %p2753_p9 = scmp.ne.s32.totalorder %s2032_s16, %s2752_s20  ;;  %p2760_p7 = scmp.lt.s32.totalorder %s2758_s23, %s2752_s20 }
 0x45a   : > { %p2754_p10 = pnand %p2753_p9, %p3748_p11  ;;  %p2761_p13 = por %p2760_p7, %p2759_p12 }
 0x45b   : > { %792 = vrot.lane.b32.xlu0 %v3213_v57, %s2832_s17  ;;  %s2018_s17 = scalar_lea.sflag [#allocation4], %s3023_s27 }
 0x45c   : > { %p2755_p2 = pneg %p2754_p10 }
 0x45e   : > { %p2762_p0 = pnand %p2761_p13, %p2755_p2 }
 0x4c4   : > { %v972_v5 = vpop.xlane.xlu1 %971 }
 0x4c5   : > { %2658 = vrcp.f32 %v972_v5 }
 0x4c6   : > { %v969_v6 = vpop.xlane.xlu0 %968 }
 0x4c7   : > { %2660 = vrcp.f32 %v969_v6 }
 0x4ca   : > { %v975_v7 = vpop.xlane.xlu0 %974 }
 0x4cb   : > { %v978_v8 = vpop.xlane.xlu1 %977  ;;  %2662 = vrcp.f32 %v975_v7 }
 0x4cc   : > { %2664 = vrcp.f32 %v978_v8 }
 0x4ce   : > { %v981_v9 = vpop.xlane.xlu0 %980 }
 0x4cf   : > { %v984_v10 = vpop.xlane.xlu1 %983  ;;  %2666 = vrcp.f32 %v981_v9 }
 0x4d0   : > { %2668 = vrcp.f32 %v984_v10 }
 0x4d2   : > { %v2659_v11 = vpop.eup %2658  ;;  %v793_v12 = vpop.permute.xlu0 %792 }
 0x4d3   : > { %v992_v13 = vmul.f32 %v2659_v11, %v972_v5  ;;  %2449 = vmatprep.subr.mxu0 %v793_v12  ;;  %v790_v15 = vpop.permute.xlu1 %789 }
 0x4d4   : > { %v2661_v14 = vpop.eup %2660  ;;  %2450 = vmatpush3.msra.mxu0 %v793_v12  ;;  %v2185_v12 = vld [vmem:[%s3709_s6] ss:$0 sm:$0xff] }
 0x4d5   : > { %v998_v16 = vsub.f32 2.0, %v992_v13  ;;  %v991_v17 = vmul.f32 %v2661_v14, %v969_v6  ;;  %2451 = vmatprep.subr.mxu0 %v790_v15 }
 0x4d6   : > { %2452 = vmatpush3.msra.mxu0 %v790_v15 }
 0x4d7   : > { %v997_v18 = vsub.f32 2.0, %v991_v17  ;;  %2453 = vmatprep.subr.mxu0 %v3213_v57  ;;  %v1004_v20 = vmul.f32 %v2659_v11, %v998_v16 }
 0x4d8   : > { %v2663_v19 = vpop.eup %2662  ;;  %2454 = vmatpush3.msra.mxu0 %v3213_v57 }
 0x4d9   : > { %v2665_v21 = vpop.eup %2664  ;;  %v1003_v22 = vmul.f32 %v2661_v14, %v997_v18  ;;  %v993_v23 = vmul.f32 %v2663_v19, %v975_v7  ;;  %2485 = vmatprep.subr.mxu0 %v2827_v2  ;;  %v1010_v28 = vmul.f32 %v3249_v51, %v1004_v20  ;;  %v1278_v51 = vld [vmem:[%s3708_s5 + $0x20] sm:$0xff] }
 0x4da   : > { %v994_v24 = vmul.f32 %v2665_v21, %v978_v8 }
 0x4db   : > { %v1009_v25 = vmul.f32 %v2649_v54, %v1003_v22  ;;  %v999_v26 = vsub.f32 2.0, %v993_v23  ;;  %v1653_v23 = vld [vmem:[%s3712_s9 + $0x108] sm:$0xff] }
 0x4dc   : > { %v2667_v27 = vpop.eup %2666  ;;  %v1000_v29 = vsub.f32 2.0, %v994_v24  ;;  %v1655_v24 = vld [vmem:[%s3712_s9 + $0x118] sm:$0xff] }
 0x4dd   : > { %v2669_v31 = vpop.eup %2668  ;;  %v1005_v32 = vmul.f32 %v2663_v19, %v999_v26  ;;  %v995_v33 = vmul.f32 %v2667_v27, %v981_v9  ;;  %2455 = vmatprep.mubr.msk.f32.mxu0 %vm930_vm3, %v1009_v25  ;;  %v1651_v25 = vld [vmem:[%s3712_s9 + $0xf8] sm:$0xff]  ;;  %v1650_v26 = vld [vmem:[%s3712_s9 + $0xf0] sm:$0xff] }
 0x4de   : > { %v1006_v57 = vmul.f32 %v2665_v21, %v1000_v29  ;;  %v996_v34 = vmul.f32 %v2669_v31, %v984_v10  ;;  %2456 = vmatmul.mubr.msk.f32.vlgmr.msra.gmra.mxu0 %vm930_vm3, %v1010_v28  ;;  %v1648_v28 = vld [vmem:[%s3712_s9 + $0xe0] sm:$0xff]  ;;  %v1647_v29 = vld [vmem:[%s3712_s9 + $0xd8] sm:$0xff] }
 0x4df   : > { %v1011_v35 = vmul.f32 %v3254_v56, %v1005_v32  ;;  %v1001_v36 = vsub.f32 2.0, %v995_v33  ;;  %2486 = vmatpush3.msra.mxu0 %v1355_v30  ;;  %v1430_v56 = vld [vmem:[%s3708_s5 + $0x40] sm:$0xff]  ;;  %v1649_v30 = vld [vmem:[%s3712_s9 + $0xe8] sm:$0xff]  ;;  %v1646_v33 = vld [vmem:[%s3712_s9 + $0xd0] sm:$0xff] }
 0x4e0   : > { %v1012_v37 = vmul.f32 %v3256_v58, %v1006_v57  ;;  %v1002_v38 = vsub.f32 2.0, %v996_v34  ;;  %2487 = vmatprep.subr.mxu0 %v2827_v2  ;;  %v1644_v32 = vld [vmem:[%s3712_s9 + $0xc0] sm:$0xff]  ;;  %v1642_v57 = vld [vmem:[%s3712_s9 + $0xb0] sm:$0xff]  ;;  %v1641_v34 = vld [vmem:[%s3712_s9 + $0xa8] sm:$0xff] }
 0x4e1   : > { %v1007_v39 = vmul.f32 %v2667_v27, %v1001_v36  ;;  %2458 = vmatprep.mubr.msk.f32.mxu0 %vm930_vm3, %v1011_v35  ;;  %2488 = vmatpush3.msra.mxu0 %v1354_v43  ;;  %v1652_v27 = vld [vmem:[%s3712_s9 + $0x100] sm:$0xff]  ;;  %v1643_v35 = vld [vmem:[%s3712_s9 + $0xb8] sm:$0xff] }
 0x4e2   : > { %v1008_v40 = vmul.f32 %v2669_v31, %v1002_v38  ;;  %2459 = vmatmul.mubr.msk.f32.gmra.mxu0 %vm930_vm3, %v1012_v37  ;;  %2499 = vmatprep.subr.mxu0 %v2827_v2  ;;  %v1645_v31 = vld [vmem:[%s3712_s9 + $0xc8] sm:$0xff]  ;;  %v1639_v36 = vld [vmem:[%s3712_s9 + $0x98] sm:$0xff]  ;;  %v1638_v37 = vld [vmem:[%s3712_s9 + $0x90] sm:$0xff] }
 0x4e3   : > { %v1013_v41 = vmul.f32 %v3262_v61, %v1007_v39  ;;  %v1640_v38 = vld [vmem:[%s3712_s9 + $0xa0] sm:$0xff] }
 0x4e4   : > { %v1014_v42 = vmul.f32 %v3264_v62, %v1008_v40  ;;  %v1636_v39 = vld [vmem:[%s3712_s9 + $0x80] sm:$0xff]  ;;  %v1635_v40 = vld [vmem:[%s3712_s9 + $0x78] sm:$0xff] }
 0x4e5   : > { %2461 = vmatprep.mubr.msk.f32.mxu0 %vm930_vm3, %v1013_v41  ;;  %v1637_v41 = vld [vmem:[%s3712_s9 + $0x88] sm:$0xff]  ;;  %v1632_v43 = vld [vmem:[%s3712_s9 + $0x60] sm:$0xff] }
 0x4e6   : > { %2462 = vmatmul.mubr.msk.f32.gmra.mxu0 %vm930_vm3, %v1014_v42  ;;  %v1633_v42 = vld [vmem:[%s3712_s9 + $0x68] sm:$0xff] }
 0x4e7   : > { %2489 = vmatprep.mubr.msk.f32.mxu0 %vm2828_vm1, %v2827_v2 }
 0x59e   : > { %v2457_v45 = vpop.f32.mrf.mxu0 }
 0x59f   : > { %2469 = vmatmul.mubr.msk.f32.vlgmr.msra.gmra.mxu1 %vm810_vm2, %v2457_v45  ;;  %v1630_v45 = vld [vmem:[%s3712_s9 + $0x50] sm:$0xff] }
 0x5a0   : > { %2472 = vmatpush3.msra.mxu1 %v1129_v44  ;;  %v1099_v47 = vpop.f32.mrf.mxu0  ;;  %2475 = vmatprep.mubr.msk.f32.mxu1 %vm2828_vm1, %v2827_v2  ;;  %v1634_v44 = vld [vmem:[%s3712_s9 + $0x70] sm:$0xff] }
 0x5a1   : > { %2473 = vmatprep.subr.mxu1 %v2827_v2 }
 0x5a2   : > { %2474 = vmatpush3.msra.mxu1 %v1128_v46  ;;  %v2460_v49 = vpop.f32.mrf.mxu0  ;;  %v1629_v46 = vld [vmem:[%s3712_s9 + $0x48] sm:$0xff] }
 0x5a3   : > { %2478 = vmatprep.subr.mxu1 %v2827_v2  ;;  %2476 = vmatmul.mubr.msk.f32.vlgmr.msra.gmra.mxu1 %vm810_vm2, %v1099_v47  ;;  %v1631_v47 = vld [vmem:[%s3712_s9 + $0x58] sm:$0xff] }
 0x5a4   : > { %2479 = vmatpush3.msra.mxu1 %v1279_v48  ;;  %2490 = vmatmul.mubr.msk.f32.vlgmr.msra.gmra.mxu0 %vm810_vm2, %v2460_v49  ;;  %v1109_v52 = vpop.f32.mrf.mxu0  ;;  %v1627_v48 = vld [vmem:[%s3712_s9 + $0x38] sm:$0xff]  ;;  %v1626_v49 = vld [vmem:[%s3712_s9 + $0x30] sm:$0xff] }
 0x5a5   : > { %2480 = vmatprep.subr.mxu1 %v2827_v2  ;;  %2500 = vmatpush3.msra.mxu0 %v1507_v50  ;;  %v1628_v50 = vld [vmem:[%s3712_s9 + $0x40] sm:$0xff] }
 0x5a6   : > { %2481 = vmatpush3.msra.mxu1 %v1278_v51  ;;  %2501 = vmatprep.subr.mxu0 %v2827_v2  ;;  %v2463_v54 = vpop.f32.mrf.mxu0  ;;  %v1624_v51 = vld [vmem:[%s3712_s9 + $0x20] sm:$0xff] }
 0x5a7   : > { %2482 = vmatprep.mubr.msk.f32.mxu1 %vm2828_vm1, %v2827_v2  ;;  %2492 = vmatprep.subr.mxu1 %v2827_v2 }
 0x5a8   : > { %2502 = vmatpush3.msra.mxu0 %v1506_v53  ;;  %2503 = vmatprep.mubr.msk.f32.mxu0 %vm2828_vm1, %v2827_v2  ;;  %v1119_v58 = vpop.f32.mrf.mxu0  ;;  %v1625_v53 = vld [vmem:[%s3712_s9 + $0x28] sm:$0xff] }
 0x5a9   : > { %2483 = vmatmul.mubr.msk.f32.vlgmr.msra.gmra.mxu1 %vm810_vm2, %v1109_v52  ;;  %2504 = vmatmul.mubr.msk.f32.vlgmr.msra.gmra.mxu0 %vm810_vm2, %v2463_v54  ;;  %v1623_v52 = vld [vmem:[%s3712_s9 + $0x18] sm:$0xff]  ;;  %v1621_v54 = vld [vmem:[%s3712_s9 + $0x8] sm:$0xff] }
 0x5aa   : > { %2493 = vmatpush3.msra.mxu1 %v1431_v55  ;;  %2496 = vmatprep.mubr.msk.f32.mxu1 %vm2828_vm1, %v2827_v2  ;;  %v1620_v55 = vld [vmem:[%s3712_s9] sm:$0xff] }
 0x5ab   : > { %2494 = vmatprep.subr.mxu1 %v2827_v2  ;;  %2506 = vmatprep.subr.mxu0 %v2827_v2 }
 0x5ac   : > { %2495 = vmatpush3.msra.mxu1 %v1430_v56  ;;  %2530 = vmatprep.mubr.msk.f32.mxu0 %vm2828_vm1, %v2827_v2  ;;  %v1622_v56 = vld [vmem:[%s3712_s9 + $0x10] sm:$0xff] }
 0x5ad   : > { %2497 = vmatmul.mubr.msk.f32.vlgmr.msra.gmra.mxu1 %vm810_vm2, %v1119_v58  ;;  %2507 = vmatpush3.msra.mxu0 %v1655_v24  ;;  %v1851_v58 = vld [vmem:[%s3714_s11 + $0xf8] sm:$0xff]  ;;  %v1861_v24 = vld [vmem:[%s3714_s11 + $0x148] sm:$0xff] }
 0x5ae   : > { %1740 = vmatprep.mubr.f32.mxu1 %v2827_v2  ;;  %2508 = vmatprep.subr.mxu0 %v2827_v2 }
 0x5af   : > { %2509 = vmatpush3.msra.mxu0 %v1652_v27  ;;  %v1860_v27 = vld [vmem:[%s3714_s11 + $0x140] sm:$0xff] }
 0x5b0   : > { %2510 = vmatprep.subr.mxu0 %v2827_v2 }
 0x5b1   : > { %2511 = vmatpush3.msra.mxu0 %v1649_v30  ;;  %v1859_v30 = vld [vmem:[%s3714_s11 + $0x138] sm:$0xff] }
 0x5b2   : > { %2512 = vmatprep.subr.mxu0 %v2827_v2 }
 0x5b3   : > { %2513 = vmatpush3.msra.mxu0 %v1646_v33  ;;  %v1858_v33 = vld [vmem:[%s3714_s11 + $0x130] sm:$0xff] }
 0x5b4   : > { %2514 = vmatprep.subr.mxu0 %v2827_v2 }
 0x5b5   : > { %2515 = vmatpush3.msra.mxu0 %v1643_v35  ;;  %v1857_v35 = vld [vmem:[%s3714_s11 + $0x128] sm:$0xff] }
 0x5b6   : > { %2516 = vmatprep.subr.mxu0 %v2827_v2 }
 0x5b7   : > { %2517 = vmatpush3.msra.mxu0 %v1640_v38  ;;  %v1856_v38 = vld [vmem:[%s3714_s11 + $0x120] sm:$0xff] }
 0x5b8   : > { %2518 = vmatprep.subr.mxu0 %v2827_v2 }
 0x5b9   : > { %2519 = vmatpush3.msra.mxu0 %v1637_v41  ;;  %v1839_v41 = vld [vmem:[%s3714_s11 + $0x98] sm:$0xff] }
 0x5ba   : > { %2520 = vmatprep.subr.mxu0 %v2827_v2 }
 0x5bb   : > { %2521 = vmatpush3.msra.mxu0 %v1634_v44  ;;  %v1838_v44 = vld [vmem:[%s3714_s11 + $0x90] sm:$0xff] }
 0x5bc   : > { %2522 = vmatprep.subr.mxu0 %v2827_v2 }
 0x5bd   : > { %2523 = vmatpush3.msra.mxu0 %v1631_v47  ;;  %v1837_v47 = vld [vmem:[%s3714_s11 + $0x88] sm:$0xff] }
 0x5be   : > { %2524 = vmatprep.subr.mxu0 %v2827_v2 }
 0x5bf   : > { %2525 = vmatpush3.msra.mxu0 %v1628_v50  ;;  %v1836_v50 = vld [vmem:[%s3714_s11 + $0x80] sm:$0xff] }
 0x5c0   : > { %2526 = vmatprep.subr.mxu0 %v2827_v2 }
 0x5c1   : > { %2527 = vmatpush3.msra.mxu0 %v1625_v53 }
 0x5c2   : > { %2528 = vmatprep.subr.mxu0 %v2827_v2 }
 0x5c3   : > { %2529 = vmatpush3.msra.mxu0 %v1622_v56 }
 0x5c4   : > { %2533 = vmatprep.subr.mxu0 %v2827_v2 }
 0x65f   : > { %v1201_v59 = vpop.f32.mrf.mxu1 }
 0x661   : > { %v2470_v60 = vpop.f32.mrf.mxu1 }
 0x663   : > { %v1274_v61 = vpop.f32.mrf.mxu1 }
 0x664   : > { %v1425_v62 = vpop.f32.mrf.mxu0  ;;  %v1275_v3 = vadd.f32 %v1274_v61, %v1201_v59 }
 0x665   : > { %v2477_v63 = vpop.f32.mrf.mxu1 }
 0x666   : > { %v2491_v1 = vpop.f32.mrf.mxu0  ;;  %v2186_v63 = vld [vmem:[%s3710_s7] ss:$0 sm:$0xff] }
 0x669   : > { %v1349_v4 = vpop.f32.mrf.mxu1  ;;  %v1577_v5 = vpop.f32.mrf.mxu0 }
 0x66a   : > { %v1353_v6 = vadd.f32 %v1349_v4, %v1275_v3  ;;  %v2187_v3 = vld [vmem:[%s3711_s8] ss:$0 sm:$0xff] }
 0x66b   : > { %v2484_v7 = vpop.f32.mrf.mxu1  ;;  %v2505_v8 = vpop.f32.mrf.mxu0 }
 0x66c   : > { %v1429_v9 = vadd.f32 %v1425_v62, %v1353_v6  ;;  %v1867_v6 = vld [vmem:[%s3714_s11 + $0x178] sm:$0xff]  ;;  %v1850_v8 = vld [vmem:[%s3714_s11 + $0xf0] sm:$0xff] }
 0x66d   : > { %v1501_v10 = vpop.f32.mrf.mxu1  ;;  %v1835_v7 = vld [vmem:[%s3714_s11 + $0x78] sm:$0xff] }
 0x66e   : > { %v1505_v11 = vadd.f32 %v1501_v10, %v1429_v9  ;;  %v1866_v9 = vld [vmem:[%s3714_s11 + $0x170] sm:$0xff] }
 0x66f   : > { %v2498_v13 = vpop.f32.mrf.mxu1  ;;  %v1834_v10 = vld [vmem:[%s3714_s11 + $0x70] sm:$0xff] }
 0x670   : > { %v1581_v14 = vadd.f32 %v1577_v5, %v1505_v11  ;;  %v1849_v11 = vld [vmem:[%s3714_s11 + $0xe8] sm:$0xff] }
 0x671   : > { %v1833_v13 = vld [vmem:[%s3714_s11 + $0x68] sm:$0xff] }
 0x672   : > { %v1589_v15 = vadd.f32 %v2185_v12, %v1581_v14  ;;  %v1865_v12 = vld [vmem:[%s3714_s11 + $0x168] sm:$0xff]  ;;  %v1848_v14 = vld [vmem:[%s3714_s11 + $0xe0] sm:$0xff] }
 0x674   : > { %v3358_v16 = vadd.f32 %v1589_v15, %v3037_v0  ;;  %v1654_v0 = vld [vmem:[%s3712_s9 + $0x110] sm:$0xff]  ;;  %v1864_v15 = vld [vmem:[%s3714_s11 + $0x160] sm:$0xff] }
 0x675   : > { %1684 = vmatprep.subr.mxu1 %v1654_v0  ;;  %v1830_v0 = vld [vmem:[%s3714_s11 + $0x50] sm:$0xff] }
 0x676   : > { %v1593_v17 = vsel %vm486_vm0, %v3358_v16, 0.0  ;;  %1685 = vmatpush1.msra.mxu1 %v1653_v23  ;;  %v1845_v23 = vld [vmem:[%s3714_s11 + $0xc8] sm:$0xff] }
 0x677   : > { %1594 = vadd.xlane.f32.xlu0 %v1593_v17  ;;  %1686 = vmatprep.subr.mxu1 %v1651_v25  ;;  %v1832_v17 = vld [vmem:[%s3714_s11 + $0x60] sm:$0xff]  ;;  %v1829_v25 = vld [vmem:[%s3714_s11 + $0x48] sm:$0xff] }
 0x678   : > { %1687 = vmatpush1.msra.mxu1 %v1650_v26  ;;  %v1844_v26 = vld [vmem:[%s3714_s11 + $0xc0] sm:$0xff] }
 0x679   : > { %1688 = vmatprep.subr.mxu1 %v1648_v28  ;;  %v1828_v28 = vld [vmem:[%s3714_s11 + $0x40] sm:$0xff] }
 0x67a   : > { %1689 = vmatpush1.msra.mxu1 %v1647_v29  ;;  %v1843_v29 = vld [vmem:[%s3714_s11 + $0xb8] sm:$0xff] }
 0x67b   : > { %1690 = vmatprep.subr.mxu1 %v1645_v31  ;;  %v1827_v31 = vld [vmem:[%s3714_s11 + $0x38] sm:$0xff] }
 0x67c   : > { %1691 = vmatpush1.msra.mxu1 %v1644_v32  ;;  %v1842_v32 = vld [vmem:[%s3714_s11 + $0xb0] sm:$0xff] }
 0x67d   : > { %1692 = vmatprep.subr.mxu1 %v1642_v57  ;;  %v1826_v57 = vld [vmem:[%s3714_s11 + $0x30] sm:$0xff] }
 0x67e   : > { %1693 = vmatpush1.msra.mxu1 %v1641_v34  ;;  %v1841_v34 = vld [vmem:[%s3714_s11 + $0xa8] sm:$0xff] }
 0x67f   : > { %1694 = vmatprep.subr.mxu1 %v1639_v36  ;;  %v1825_v36 = vld [vmem:[%s3714_s11 + $0x28] sm:$0xff] }
 0x680   : > { %1695 = vmatpush1.msra.mxu1 %v1638_v37  ;;  %v1840_v37 = vld [vmem:[%s3714_s11 + $0xa0] sm:$0xff] }
 0x681   : > { %1696 = vmatprep.subr.mxu1 %v1636_v39  ;;  %v1824_v39 = vld [vmem:[%s3714_s11 + $0x20] sm:$0xff] }
 0x682   : > { %1697 = vmatpush1.msra.mxu1 %v1635_v40  ;;  %v1855_v40 = vld [vmem:[%s3714_s11 + $0x118] sm:$0xff] }
 0x683   : > { %1698 = vmatprep.subr.mxu1 %v1633_v42  ;;  %v1854_v42 = vld [vmem:[%s3714_s11 + $0x110] sm:$0xff] }
 0x684   : > { %1699 = vmatpush1.msra.mxu1 %v1632_v43  ;;  %v1823_v43 = vld [vmem:[%s3714_s11 + $0x18] sm:$0xff] }
 0x685   : > { %1700 = vmatprep.subr.mxu1 %v1630_v45  ;;  %v1853_v45 = vld [vmem:[%s3714_s11 + $0x108] sm:$0xff] }
 0x686   : > { %1701 = vmatpush1.msra.mxu1 %v1629_v46  ;;  %v1822_v46 = vld [vmem:[%s3714_s11 + $0x10] sm:$0xff] }
 0x687   : > { %1702 = vmatprep.subr.mxu1 %v1627_v48  ;;  %v1852_v48 = vld [vmem:[%s3714_s11 + $0x100] sm:$0xff] }
 0x688   : > { %1703 = vmatpush1.msra.mxu1 %v1626_v49  ;;  %v1821_v49 = vld [vmem:[%s3714_s11 + $0x8] sm:$0xff] }
 0x689   : > { %1704 = vmatprep.subr.mxu1 %v1624_v51  ;;  %v1658_v51 = vlaneseq }
 0x68a   : > { %1705 = vmatpush1.msra.mxu1 %v1623_v52 }
 0x68b   : > { %1706 = vmatprep.subr.mxu1 %v1621_v54  ;;  %v1659_v52 = vshrl.u32 %v1658_v51, 7  ;;  %v1656_v54 = vld [vmem:[%s3713_s10] sm:$0x7] }
 0x68c   : > { %1707 = vmatpush1.msra.mxu1 %v1620_v55 }
 0x68d   : > { %2289 = vmatprep.subr.mxu1 %v1851_v58  ;;  %v1668_v53 = vsub.s32 2, %v1659_v52  ;;  %v1660_v55 = vsub.s32 0, %v1659_v52  ;;  %v1664_v56 = vsub.s32 1, %v1659_v52 }
 0x68f   : > { %v1669_v58 = vrot.slane %v1656_v54, %v1668_v53 }
 0x700   : > { %v1595_v18 = vpop.xlane.xlu0 %1594 }
 0x701   : > { %v1596_v19 = vmul.f32 0.010416667, %v1595_v18  ;;  %v1847_v18 = vld [vmem:[%s3714_s11 + $0xd8] sm:$0xff] }
 0x703   : > { %v3363_v20 = vsub.f32 %v3358_v16, %v1596_v19  ;;  %v1863_v19 = vld [vmem:[%s3714_s11 + $0x158] sm:$0xff] }
 0x705   : > { %v1598_v21 = vmul.f32 %v3363_v20, %v3363_v20 }
 0x707   : > { %v1599_v22 = vsel %vm486_vm0, %v1598_v21, 0.0  ;;  %v1846_v21 = vld [vmem:[%s3714_s11 + $0xd0] sm:$0xff] }
 0x708   : > { %1600 = vadd.xlane.f32.xlu1 %v1599_v22  ;;  %v1862_v22 = vld [vmem:[%s3714_s11 + $0x150] sm:$0xff] }
 0x791   : > { %v1601_v59 = vpop.xlane.xlu1 %1600 }
 0x792   : > { %v1602_v60 = vmul.f32 0.010416667, %v1601_v59  ;;  %v1661_v59 = vrot.slane %v1656_v54, %v1660_v55 }
 0x794   : > { %v1603_v61 = vadd.f32 1e-05, %v1602_v60  ;;  %v1665_v60 = vrot.slane %v1656_v54, %v1664_v56 }
 0x796   : > { %2670 = vrsqrt.f32 %v1603_v61 }
 0x7a3   : > { %v2671_v62 = vpop.eup %2670 }
 0x7a4   : > { %v1605_v1 = vmul.f32 %v2671_v62, %v3363_v20  ;;  %v1831_v20 = vld [vmem:[%s3714_s11 + $0x58] sm:$0xff] }
 0x7a6   : > { %v1612_v4 = vmul.f32 %v2186_v63, %v1605_v1 }
 0x7a8   : > { %v1619_v5 = vadd.f32 %v2187_v3, %v1612_v4 }
 0x7aa   : > { %2188 = vmatmul.mubr.msk.f32.vlgmr.msra.gmra.mxu1 %vm486_vm0, %v1619_v5  ;;  %2531 = vmatmul.mubr.msk.f32.vlgmr.msra.gmra.mxu0 %vm486_vm0, %v1619_v5 }
 0x7ab   : > { %2534 = vmatpush3.msra.mxu0 %v1867_v6  ;;  %2290 = vmatpush3.msra.mxu1 %v1835_v7 }
 0x7ac   : > { %2535 = vmatprep.subr.mxu0 %v2827_v2  ;;  %2291 = vmatprep.subr.mxu1 %v1850_v8 }
 0x7ad   : > { %2536 = vmatpush3.msra.mxu0 %v1866_v9  ;;  %2292 = vmatpush3.msra.mxu1 %v1834_v10 }
 0x7ae   : > { %2537 = vmatprep.subr.mxu0 %v2827_v2  ;;  %2293 = vmatprep.subr.mxu1 %v1849_v11 }
 0x7af   : > { %2538 = vmatpush3.msra.mxu0 %v1865_v12  ;;  %2294 = vmatpush3.msra.mxu1 %v1833_v13  ;;  %v2190_v12 = vld [vmem:[%s3715_s12] ss:$0 sm:$0xff] }
 0x7b0   : > { %2539 = vmatprep.subr.mxu0 %v2827_v2  ;;  %2295 = vmatprep.subr.mxu1 %v1848_v14 }
 0x7b1   : > { %2540 = vmatpush3.msra.mxu0 %v1864_v15  ;;  %2296 = vmatpush3.msra.mxu1 %v1832_v17 }
 0x7b2   : > { %2541 = vmatprep.subr.mxu0 %v2827_v2  ;;  %2297 = vmatprep.subr.mxu1 %v1847_v18 }
 0x7b3   : > { %2542 = vmatpush3.msra.mxu0 %v1863_v19  ;;  %2298 = vmatpush3.msra.mxu1 %v1831_v20 }
 0x7b4   : > { %2543 = vmatprep.subr.mxu0 %v2827_v2  ;;  %2299 = vmatprep.subr.mxu1 %v1846_v21 }
 0x7b5   : > { %2544 = vmatpush3.msra.mxu0 %v1862_v22  ;;  %2300 = vmatpush3.msra.mxu1 %v1830_v0 }
 0x7b6   : > { %2545 = vmatprep.subr.mxu0 %v2827_v2  ;;  %2301 = vmatprep.subr.mxu1 %v1845_v23 }
 0x7b7   : > { %2546 = vmatpush3.msra.mxu0 %v1861_v24  ;;  %2302 = vmatpush3.msra.mxu1 %v1829_v25 }
 0x7b8   : > { %2547 = vmatprep.subr.mxu0 %v2827_v2  ;;  %2303 = vmatprep.subr.mxu1 %v1844_v26 }
 0x7b9   : > { %2548 = vmatpush3.msra.mxu0 %v1860_v27  ;;  %2304 = vmatpush3.msra.mxu1 %v1828_v28 }
 0x7ba   : > { %2549 = vmatprep.subr.mxu0 %v2827_v2  ;;  %2305 = vmatprep.subr.mxu1 %v1843_v29 }
 0x7bb   : > { %2550 = vmatpush3.msra.mxu0 %v1859_v30  ;;  %2306 = vmatpush3.msra.mxu1 %v1827_v31 }
 0x7bc   : > { %2551 = vmatprep.subr.mxu0 %v2827_v2  ;;  %2307 = vmatprep.subr.mxu1 %v1842_v32 }
 0x7bd   : > { %2552 = vmatpush3.msra.mxu0 %v1858_v33  ;;  %2308 = vmatpush3.msra.mxu1 %v1826_v57 }
 0x7be   : > { %2553 = vmatprep.subr.mxu0 %v2827_v2  ;;  %2309 = vmatprep.subr.mxu1 %v1841_v34 }
 0x7bf   : > { %2554 = vmatpush3.msra.mxu0 %v1857_v35  ;;  %2310 = vmatpush3.msra.mxu1 %v1825_v36 }
 0x7c0   : > { %2555 = vmatprep.subr.mxu0 %v2827_v2  ;;  %2311 = vmatprep.subr.mxu1 %v1840_v37 }
 0x7c1   : > { %2556 = vmatpush3.msra.mxu0 %v1856_v38  ;;  %2312 = vmatpush3.msra.mxu1 %v1824_v39 }
 0x7c2   : > { %2557 = vmatprep.subr.mxu0 %v2827_v2  ;;  %2565 = vmatprep.mubr.msk.f32.mxu0 %vm2828_vm1, %v2827_v2 }
 0x7c3   : > { %2558 = vmatpush3.msra.mxu0 %v1855_v40  ;;  %2313 = vmatprep.subr.mxu1 %v1839_v41 }
 0x7c4   : > { %2559 = vmatprep.subr.mxu0 %v2827_v2  ;;  %2314 = vmatpush3.msra.mxu1 %v1823_v43 }
 0x7c5   : > { %2560 = vmatpush3.msra.mxu0 %v1854_v42  ;;  %2315 = vmatprep.subr.mxu1 %v1838_v44 }
 0x7c6   : > { %2561 = vmatprep.subr.mxu0 %v2827_v2  ;;  %2316 = vmatpush3.msra.mxu1 %v1822_v46 }
 0x7c7   : > { %2562 = vmatpush3.msra.mxu0 %v1853_v45  ;;  %2317 = vmatprep.subr.mxu1 %v1837_v47 }
 0x7c8   : > { %2563 = vmatprep.subr.mxu0 %v2827_v2  ;;  %2318 = vmatpush3.msra.mxu1 %v1821_v49  ;;  %v1820_v2 = vld [vmem:[%s3714_s11] sm:$0xff] }
 0x7c9   : > { %2564 = vmatpush3.msra.mxu0 %v1852_v48  ;;  %2319 = vmatprep.subr.mxu1 %v1836_v50 }
 0x7ca   : > { %2320 = vmatpush3.msra.mxu1 %v1820_v2 }
 0x86a   : > { %v1742_v61 = vpop.f32.mrf.mxu1  ;;  %v1813_v62 = vpop.f32.mrf.mxu0 }
 0x86b   : > { %v1814_v63 = vadd.f32 %v1813_v62, %v1669_v58  ;;  %v1743_v1 = vadd.f32 %v1742_v61, %v1661_v59 }
 0x86c   : > { %v1744_v3 = vpop.f32.mrf.mxu1  ;;  %v2532_v4 = vpop.f32.mrf.mxu0 }
 0x86d   : > { %v1819_v5 = vmax.f32 %v1814_v63, 0.0  ;;  %v1745_v6 = vadd.f32 %v1744_v3, %v1665_v60  ;;  %v1817_v8 = vmax.f32 %v1743_v1, 0.0 }
 0x86f   : > { %v1818_v7 = vmax.f32 %v1745_v6, 0.0  ;;  %2566 = vmatmul.mubr.f32.vlgmr.msra.gmra.mxu0 %v1819_v5 }
 0x871   : > { %1939 = vmatprep.mubr.f32.mxu1 %v1818_v7 }
 0x872   : > { %1940 = vmatmul.mubr.f32.vlgmr.msra.gmra.mxu1 %v1817_v8 }
 0x92f   : > { %v2011_v9 = vpop.f32.mrf.mxu0 }
 0x931   : > { %v2567_v10 = vpop.f32.mrf.mxu0 }
 0x932   : > { %v2321_v11 = vpop.f32.mrf.mxu1 }
 0x934   : > { %v2322_v13 = vpop.f32.mrf.mxu1 }
 0x935   : > { %v2323_v14 = vadd.f32 %v2322_v13, %v2321_v11 }
 0x937   : > { %v1942_v15 = vadd.f32 %v2323_v14, %v2190_v12 }
 0x939   : > { %v2012_v17 = vadd.f32 %v2011_v9, %v1942_v15 }
 0x93b   : > { %v2015_v18 = vadd.f32 %v2012_v17, %v3358_v16 }
 0x93d   : > { %2016 = vst.msk [vmem:[%s482_s14] sm:$0xff] %vm486_vm0, %v2015_v18 }
 0x93e   : > { %2765 = shalt.err (!%p2762_p0)
}
 0x93f   : > { %s2766_s19 = scalar_lea.hbm %s2029_s21, 128  ;;  %s2770_s15 = scalar_lea.hbm %s3716_s13, 256 }
 0x940   : > { %p2767_p5 = scmp.ne.s32.totalorder %s2029_s21, %s2766_s19  ;;  %p2771_p4 = scmp.lt.s32.totalorder %s2029_s21, %s3716_s13 }
 0x941   : > { %p2772_p6 = scmp.lt.s32.totalorder %s2770_s15, %s2766_s19 }
 0x942   : > { %p2768_p3 = pnand %p2767_p5, %p3748_p11 }
 0x943   : > { %p2773_p8 = por %p2772_p6, %p2771_p4 }
 0x944   : > { %p2769_p1 = pneg %p2768_p3 }
 0x946   : > { %p2774_p9 = pnand %p2773_p8, %p2769_p1 }
 0x948   : > { %2777 = shalt.err (!%p2774_p9)
}
 0x949   : > { %2578 = dma.vmem_to_hbm [thread:$0]  (%p3748_p11), %s2032_s16, 128, %s2029_s21, %s2018_s17  }
 0x94a PF: > { %s3749_s2 = sld [smem:[#allocation12_spill]] }
 0x94b   : > { %s3750_s14 = sld [smem:[#allocation15_spill]] }
 0x94c   : > { %s3751_s22 = sld [smem:[#allocation14_spill]] }
 0x950   : > { %s2043_s18 = sand.u32 1, %s3749_s2  }
 0x951   : > { %p3752_p10 = scmp.ne.s32.totalorder %s3750_s14, 0  ;;  %s2044_s20 = scalar_lea.sflag [#allocation4], %s2043_s18 }
 0x952   : > { %p3753_p2 = scmp.ge.s32.totalorder %s3751_s22, 2 }
 0x954   : > { %p2592_p12 = pnand %p3753_p2, %p3752_p10 }
 0x956   : > { %p2593_p7 = pneg %p2592_p12 }
 0x958   : > { %2803 = dma.done.wait (%p2593_p7), %s2044_s20, 128  }
 0x959   : > { %2805 = vsyncadd (%p2593_p7), %s2044_s20, 4294967168  ;;  %s3754_s28 = sld [smem:[#allocation16_spill]]  ;;  %s3757_s25 = smov %s2812_s26 }
 0x95a   : > { %s3755_s29 = sld [smem:[#allocation13_spill]] }
 0x95b   : > { %s3756_s27 = sld [smem:[#allocation17_spill]] }
 0x95f   : > { %p27_p13 = scmp.ge.s32.totalorder %s3754_s28, 4  }
 0x960   : > { %s3758_s26 = smov %s3755_s29 }
 0x961   :  { %29 = sbr.rel (!%p27_p13) target bundleno = 9 (0x9), region = 127 }
 0x966   :  { %2049 = vsyncpa [#allocation3], 1 }
 0x967   :  { %2051 = vsyncpa [#allocation3 + $0x1], 1 }
 0x968   :  { %2052 = vsyncpa [#allocation6], 1 }
 0x969   :  { %2053 = vsyncpa [#allocation4], 1 }
 0x96a   :  { %2055 = vsyncpa [#allocation4 + $0x1], 1 }

</bundles_post_ra>
